<compile_context>
chip_gen: v6e
topology: v6e:2x2x1
jax: 0.10.0
libtpu: 0.0.40
codegen_flags: <defaults>
</compile_context>

<pallas_src>
import jax
import jax.numpy as jnp
from jax.experimental import pallas as pl
from jax.experimental.pallas import tpu as pltpu


# -----------------------------------------------------------------------------
# Single fused kernel: LSTM layer 0 + LSTM layer 1 (wavefronted) ->
# Linear/ReLU/Linear head -> temporal Linear(T -> P).
# Kernel-side gate order: i, f, o, g  (reordered from PyTorch's i, f, g, o).
# -----------------------------------------------------------------------------
def _fused_lstm_head_kernel(
    x_ref,        # (T*B, D)    time-major flattened input, row = t*B + b
    wih0_ref,     # (D, 4H)     layer-0 input weights (transposed, gates i,f,o,g)
    whh0_ref,     # (H, 4H)     layer-0 recurrent weights (h @ W)
    b0_ref,       # (1, 4H)     layer-0 fused bias (b_ih + b_hh)
    w1c_ref,      # (2H, 4H)    layer-1 combined [W_ih1; W_hh1]
    b1_ref,       # (1, 4H)     layer-1 fused bias
    h_init_ref,   # (2, B, H)   initial hidden state per layer
    c_init_ref,   # (2, B, H)   initial cell state per layer
    wm1_ref,      # (H, H)      reg Linear 1 (transposed)
    bm1_ref,      # (1, H)
    wm2_ref,      # (H, O)      reg Linear 2 (transposed)
    bm2_ref,      # (1, O)
    lwbig_ref,    # (B*P, T*B)  block-diag expanded temporal-Linear weight
    lbexp_ref,    # (B*P, 1)    expanded temporal-Linear bias
    out_ref,      # (B*P, O)    kernel output (wrapper reshapes to (B, P, O))
):
    f32 = jnp.float32
    _, B, H = h_init_ref.shape
    TB = x_ref.shape[0]
    T = TB // B

    def sigmoid(x):
        # tanh form keeps every transcendental on the EUP as a tanh.
        return 0.5 * (jnp.tanh(0.5 * x) + 1.0)

    def lstm_step(gates, h, c):
        # gates: (B, 4H) pre-activations in (i, f, o, g) order.
        sio = sigmoid(gates[:, : 3 * H])          # one EUP slab for i, f, o
        i_t = sio[:, 0 * H:1 * H]
        f_t = sio[:, 1 * H:2 * H]
        o_t = sio[:, 2 * H:3 * H]
        g_t = jnp.tanh(gates[:, 3 * H:4 * H])
        c_new = f_t * c + i_t * g_t
        h_new = o_t * jnp.tanh(c_new)
        return h_new, c_new

    # Hoisted layer-0 input projection: ONE (T*B, D) x (D, 4H) matmul; kept as
    # a live value and sliced per step (no scratch round-trip).
    xp0 = jnp.dot(x_ref[...], wih0_ref[...], preferred_element_type=f32) + b0_ref[...]

    whh0 = whh0_ref[...]
    w1c = w1c_ref[...]
    b1 = b1_ref[...]

    h0, c0 = h_init_ref[0], c_init_ref[0]
    h1, c1 = h_init_ref[1], c_init_ref[1]

    ys1 = []
    # Wavefront: layer-0 step t and layer-1 step t share one unrolled iteration;
    # layer-0 step t+1 is independent of layer-1 step t, so the two recurrence
    # chains overlap in the MXU/EUP/VALU pipelines.
    for t in range(T):
        # Layer 0, step t: hoisted input term + one fused recurrent matmul.
        g0 = xp0[t * B:(t + 1) * B, :] + jnp.dot(h0, whh0, preferred_element_type=f32)
        h0, c0 = lstm_step(g0, h0, c0)

        # Layer 1, step t: input proj + recurrence fused into ONE matmul.
        inp1 = jnp.concatenate([h0, h1], axis=1)          # (B, 2H)
        g1 = jnp.dot(inp1, w1c, preferred_element_type=f32) + b1
        h1, c1 = lstm_step(g1, h1, c1)
        ys1.append(h1)

    # Layer-1 output sequence, time-major (row = t*B + b); one concat, no scratch.
    y1 = jnp.concatenate(ys1, axis=0)                     # (T*B, H)

    # reg head (Linear -> ReLU -> Linear), batched over all T*B positions.
    hmid = jnp.dot(y1, wm1_ref[...], preferred_element_type=f32) + bm1_ref[...]
    hmid = jnp.maximum(hmid, 0.0)
    reg = jnp.dot(hmid, wm2_ref[...], preferred_element_type=f32) + bm2_ref[...]   # (T*B, O)

    # Temporal Linear(T -> P) as ONE small matmul against the pre-expanded
    # block-diagonal weight:  out[b*P+p, o] = sum_t lw[t,p] * reg[t*B+b, o] + lb[p].
    out_ref[...] = (jnp.dot(lwbig_ref[...], reg, preferred_element_type=f32)
                    + lbexp_ref[...])


# -----------------------------------------------------------------------------
# Wrapper: one pallas_call for the whole forward pass.
# -----------------------------------------------------------------------------
def _reorder_gates(w):
    """Permute last-dim gate blocks from PyTorch (i,f,g,o) to kernel (i,f,o,g)."""
    H = w.shape[-1] // 4
    return jnp.concatenate(
        [w[..., 0:2 * H], w[..., 3 * H:4 * H], w[..., 2 * H:3 * H]], axis=-1)


def _my_lstm_pallas(x_btd, params, h0, c0):
    """x_btd: (B, T, D); h0/c0: (2, B, H). Returns (B, pred_len, output_size)."""
    B, T, D = x_btd.shape
    H = h0.shape[-1]
    O = params["reg_w2"].shape[-1]
    P = params["lin_w"].shape[-1]
    assert len(params["lstm"]) == 2, "fused kernel is specialized to num_layers=2"

    # ---- parameter re-layout (tiny, done once per call in XLA) -------------
    l0, l1 = params["lstm"]
    wih0 = _reorder_gates(l0["w_ih"])                  # (D, 4H)
    whh0 = _reorder_gates(l0["w_hh"])                  # (H, 4H)
    b0 = _reorder_gates(l0["b"])                       # (1, 4H)
    wih1 = _reorder_gates(l1["w_ih"])                  # (H, 4H)
    whh1 = _reorder_gates(l1["w_hh"])                  # (H, 4H)
    b1 = _reorder_gates(l1["b"])                       # (1, 4H)
    w1c = jnp.concatenate([wih1, whh1], axis=0)        # (2H, 4H)

    # Time-major flatten (row = t*B + b); done once outside the kernel.
    x2d = jnp.transpose(x_btd, (1, 0, 2)).reshape(T * B, D)

    # Block-diagonal expansion of the temporal Linear weight so the epilogue
    # is one MXU matmul:  lw_big[b*P+p, t*B+b'] = lw[t,p] * (b==b').
    lw = params["lin_w"]                               # (T, P)
    lb = params["lin_b"]                               # (1, P)
    eye_b = jnp.eye(B, dtype=jnp.float32)
    lw_big = jnp.einsum("tp,bc->bptc", lw, eye_b).reshape(B * P, T * B)
    lb_exp = jnp.tile(lb, (B, 1)).reshape(B * P, 1)

    vmem = pltpu.MemorySpace.VMEM
    out_flat = pl.pallas_call(
        _fused_lstm_head_kernel,
        out_shape=jax.ShapeDtypeStruct((B * P, O), jnp.float32),
        in_specs=[pl.BlockSpec(memory_space=vmem)] * 14,
        out_specs=pl.BlockSpec(memory_space=vmem),
    )(x2d,
      wih0, whh0, b0,
      w1c, b1,
      h0, c0,
      params["reg_w1"], params["reg_b1"], params["reg_w2"], params["reg_b2"],
      lw_big, lb_exp)
    return out_flat.reshape(B, P, O)                   # (B, P, O)


my_lstm_forward = jax.jit(_my_lstm_pallas)


# -----------------------------------------------------------------------------
# Parameter construction (deterministic, PyTorch-shaped, stored transposed in
# PyTorch gate order i,f,g,o; the wrapper derives the kernel layout).
# -----------------------------------------------------------------------------
def init_params(key, input_size, hidden_size, num_layers, output_size,
                seq_len, pred_len):
    H = hidden_size
    k = 1.0 / (hidden_size ** 0.5)
    params = {"lstm": []}
    for layer in range(num_layers):
        d_in = input_size if layer == 0 else H
        key, k1, k2, k3, k4 = jax.random.split(key, 5)
        w_ih = jax.random.uniform(k1, (4 * H, d_in), jnp.float32, -k, k)
        w_hh = jax.random.uniform(k2, (4 * H, H), jnp.float32, -k, k)
        b_ih = jax.random.uniform(k3, (4 * H,), jnp.float32, -k, k)
        b_hh = jax.random.uniform(k4, (4 * H,), jnp.float32, -k, k)
        params["lstm"].append({
            "w_ih": jnp.transpose(w_ih),               # (d_in, 4H), gates i,f,g,o
            "w_hh": jnp.transpose(w_hh),               # (H, 4H)
            "b": (b_ih + b_hh)[None, :],               # (1, 4H)
        })
    key, k1, k2, k3, k4, k5, k6 = jax.random.split(key, 7)
    params["reg_w1"] = jnp.transpose(
        jax.random.uniform(k1, (H, H), jnp.float32, -k, k))            # (H, H)
    params["reg_b1"] = jax.random.uniform(k2, (1, H), jnp.float32, -k, k)
    params["reg_w2"] = jnp.transpose(
        jax.random.uniform(k3, (output_size, H), jnp.float32, -k, k))  # (H, O)
    params["reg_b2"] = jax.random.uniform(k4, (1, output_size), jnp.float32, -k, k)
    ks = 1.0 / (seq_len ** 0.5)
    params["lin_w"] = jnp.transpose(
        jax.random.uniform(k5, (pred_len, seq_len), jnp.float32, -ks, ks))  # (T, P)
    params["lin_b"] = jax.random.uniform(k6, (1, pred_len), jnp.float32, -ks, ks)
    return params


# -----------------------------------------------------------------------------
# Pure-JAX reference (same canonical param layout) for a correctness check.
# -----------------------------------------------------------------------------
def reference_forward(x_btd, params, h0, c0):
    B, T, _ = x_btd.shape
    H = h0.shape[-1]
    hp = jax.lax.Precision.HIGHEST
    seq = x_btd
    for layer, p in enumerate(params["lstm"]):
        h, c = h0[layer], c0[layer]
        ys = []
        for t in range(T):
            gates = (jnp.dot(seq[:, t, :], p["w_ih"], precision=hp)
                     + jnp.dot(h, p["w_hh"], precision=hp) + p["b"])
            i = jax.nn.sigmoid(gates[:, 0:H])
            f = jax.nn.sigmoid(gates[:, H:2 * H])
            g = jnp.tanh(gates[:, 2 * H:3 * H])
            o = jax.nn.sigmoid(gates[:, 3 * H:4 * H])
            c = f * c + i * g
            h = o * jnp.tanh(c)
            ys.append(h)
        seq = jnp.stack(ys, axis=1)                                    # (B, T, H)
    hmid = jnp.maximum(
        jnp.einsum("bth,hk->btk", seq, params["reg_w1"], precision=hp)
        + params["reg_b1"], 0.0)
    reg = jnp.einsum("bth,ho->bto", hmid, params["reg_w2"], precision=hp) \
        + params["reg_b2"]                                             # (B, T, O)
    out = jnp.einsum("bto,tp->bpo", reg, params["lin_w"], precision=hp) \
        + params["lin_b"][:, :, None]                                  # (B, P, O)
    return out


if __name__ == "__main__":
    # Small, module-consistent shapes.
    B, T, D = 2, 8, 12          # batch, seq_len, input_size
    H, L = 32, 2                # hidden_size, num_layers
    O, P = 1, 4                 # output_size, pred_len

    key = jax.random.PRNGKey(0)
    kx, kh, kc, kp = jax.random.split(key, 4)
    x = jax.random.normal(kx, (B, T, D), jnp.float32)
    # initial_hidden_state: torch.randn(num_layers, B, H) -> deterministic normal here.
    h0 = jax.random.normal(kh, (L, B, H), jnp.float32)
    c0 = jax.random.normal(kc, (L, B, H), jnp.float32)

    params = init_params(kp, D, H, L, O, T, P)

    y = my_lstm_forward(x, params, h0, c0)
    jax.block_until_ready(y)
    assert y.shape == (B, P, O), y.shape

    y_ref = reference_forward(x, params, h0, c0)
    max_err = float(jnp.max(jnp.abs(y - y_ref)))
    assert max_err < 5e-2, f"mismatch vs reference: max abs err {max_err}"

    print("KERNEL_OK")
</pallas_src>

<mosaic_0001>
module attributes {stable_mosaic.version = 11 : i64} {
  func.func @_fused_lstm_head_kernel(%arg0: memref<16x12xf32, #tpu.memory_space<vmem>>, %arg1: memref<12x128xf32, #tpu.memory_space<vmem>>, %arg2: memref<32x128xf32, #tpu.memory_space<vmem>>, %arg3: memref<1x128xf32, #tpu.memory_space<vmem>>, %arg4: memref<64x128xf32, #tpu.memory_space<vmem>>, %arg5: memref<1x128xf32, #tpu.memory_space<vmem>>, %arg6: memref<2x2x32xf32, #tpu.memory_space<vmem>>, %arg7: memref<2x2x32xf32, #tpu.memory_space<vmem>>, %arg8: memref<32x32xf32, #tpu.memory_space<vmem>>, %arg9: memref<1x32xf32, #tpu.memory_space<vmem>>, %arg10: memref<32x1xf32, #tpu.memory_space<vmem>>, %arg11: memref<1x1xf32, #tpu.memory_space<vmem>>, %arg12: memref<8x16xf32, #tpu.memory_space<vmem>>, %arg13: memref<8x1xf32, #tpu.memory_space<vmem>>, %arg14: memref<8x1xf32, #tpu.memory_space<vmem>>) attributes {dimension_semantics = [], scalar_prefetch = 0 : i64, scratch_operands = 0 : i64, tpu.core_type = #tpu.core_type<tc>} {
    %c0 = arith.constant 0 : index
    %c0_0 = arith.constant 0 : index
    %0 = vector.load %arg0[%c0, %c0_0] : memref<16x12xf32, #tpu.memory_space<vmem>>, vector<16x12xf32>
    %c0_1 = arith.constant 0 : index
    %c0_2 = arith.constant 0 : index
    %1 = vector.load %arg1[%c0_1, %c0_2] : memref<12x128xf32, #tpu.memory_space<vmem>>, vector<12x128xf32>
    %cst = arith.constant dense<0.000000e+00> : vector<16x128xf32>
    %2 = tpu.matmul %0, %1, %cst {dimension_numbers = #tpu.dot_dimension_numbers<[1], [0], [0], [1], [0, 0, 1, 1], [], []>} : vector<16x12xf32>, vector<12x128xf32>, vector<16x128xf32> -> vector<16x128xf32>
    %c0_3 = arith.constant 0 : index
    %c0_4 = arith.constant 0 : index
    %3 = vector.load %arg3[%c0_3, %c0_4] : memref<1x128xf32, #tpu.memory_space<vmem>>, vector<1x128xf32>
    %4 = vector.broadcast %3 : vector<1x128xf32> to vector<16x128xf32>
    %5 = arith.addf %2, %4 : vector<16x128xf32>
    %c0_5 = arith.constant 0 : index
    %c0_6 = arith.constant 0 : index
    %6 = vector.load %arg2[%c0_5, %c0_6] : memref<32x128xf32, #tpu.memory_space<vmem>>, vector<32x128xf32>
    %c0_7 = arith.constant 0 : index
    %c0_8 = arith.constant 0 : index
    %7 = vector.load %arg4[%c0_7, %c0_8] : memref<64x128xf32, #tpu.memory_space<vmem>>, vector<64x128xf32>
    %c0_9 = arith.constant 0 : index
    %c0_10 = arith.constant 0 : index
    %8 = vector.load %arg5[%c0_9, %c0_10] : memref<1x128xf32, #tpu.memory_space<vmem>>, vector<1x128xf32>
    %c0_11 = arith.constant 0 : index
    %c0_12 = arith.constant 0 : index
    %c0_13 = arith.constant 0 : index
    %9 = vector.load %arg6[%c0_11, %c0_12, %c0_13] : memref<2x2x32xf32, #tpu.memory_space<vmem>>, vector<1x2x32xf32>
    %10 = vector.shape_cast %9 : vector<1x2x32xf32> to vector<2x32xf32>
    %c0_14 = arith.constant 0 : index
    %c0_15 = arith.constant 0 : index
    %c0_16 = arith.constant 0 : index
    %11 = vector.load %arg7[%c0_14, %c0_15, %c0_16] : memref<2x2x32xf32, #tpu.memory_space<vmem>>, vector<1x2x32xf32>
    %12 = vector.shape_cast %11 : vector<1x2x32xf32> to vector<2x32xf32>
    %c1 = arith.constant 1 : index
    %c0_17 = arith.constant 0 : index
    %c0_18 = arith.constant 0 : index
    %13 = vector.load %arg6[%c1, %c0_17, %c0_18] : memref<2x2x32xf32, #tpu.memory_space<vmem>>, vector<1x2x32xf32>
    %14 = vector.shape_cast %13 : vector<1x2x32xf32> to vector<2x32xf32>
    %c1_19 = arith.constant 1 : index
    %c0_20 = arith.constant 0 : index
    %c0_21 = arith.constant 0 : index
    %15 = vector.load %arg7[%c1_19, %c0_20, %c0_21] : memref<2x2x32xf32, #tpu.memory_space<vmem>>, vector<1x2x32xf32>
    %16 = vector.shape_cast %15 : vector<1x2x32xf32> to vector<2x32xf32>
    %17 = vector.extract_strided_slice %5 {offsets = [0, 0], sizes = [2, 128], strides = [1, 1]} : vector<16x128xf32> to vector<2x128xf32>
    %cst_22 = arith.constant dense<0.000000e+00> : vector<2x128xf32>
    %18 = tpu.matmul %10, %6, %cst_22 {dimension_numbers = #tpu.dot_dimension_numbers<[1], [0], [0], [1], [0, 0, 1, 1], [], []>} : vector<2x32xf32>, vector<32x128xf32>, vector<2x128xf32> -> vector<2x128xf32>
    %19 = arith.addf %17, %18 : vector<2x128xf32>
    %20 = vector.extract_strided_slice %19 {offsets = [0, 0], sizes = [2, 96], strides = [1, 1]} : vector<2x128xf32> to vector<2x96xf32>
    %cst_23 = arith.constant 5.000000e-01 : f32
    %21 = vector.broadcast %cst_23 : f32 to vector<2x96xf32>
    %22 = arith.mulf %21, %20 : vector<2x96xf32>
    %23 = math.tanh %22 : vector<2x96xf32>
    %cst_24 = arith.constant 1.000000e+00 : f32
    %24 = vector.broadcast %cst_24 : f32 to vector<2x96xf32>
    %25 = arith.addf %23, %24 : vector<2x96xf32>
    %cst_25 = arith.constant 5.000000e-01 : f32
    %26 = vector.broadcast %cst_25 : f32 to vector<2x96xf32>
    %27 = arith.mulf %26, %25 : vector<2x96xf32>
    %28 = vector.extract_strided_slice %27 {offsets = [0, 0], sizes = [2, 32], strides = [1, 1]} : vector<2x96xf32> to vector<2x32xf32>
    %29 = vector.extract_strided_slice %27 {offsets = [0, 32], sizes = [2, 32], strides = [1, 1]} : vector<2x96xf32> to vector<2x32xf32>
    %30 = vector.extract_strided_slice %27 {offsets = [0, 64], sizes = [2, 32], strides = [1, 1]} : vector<2x96xf32> to vector<2x32xf32>
    %31 = vector.extract_strided_slice %19 {offsets = [0, 96], sizes = [2, 32], strides = [1, 1]} : vector<2x128xf32> to vector<2x32xf32>
    %32 = math.tanh %31 : vector<2x32xf32>
    %33 = arith.mulf %29, %12 : vector<2x32xf32>
    %34 = arith.mulf %28, %32 : vector<2x32xf32>
    %35 = arith.addf %33, %34 : vector<2x32xf32>
    %36 = math.tanh %35 : vector<2x32xf32>
    %37 = arith.mulf %30, %36 : vector<2x32xf32>
    %38 = tpu.concatenate %37, %14 in 1 : vector<2x32xf32>, vector<2x32xf32> -> vector<2x64xf32>
    %cst_26 = arith.constant dense<0.000000e+00> : vector<2x128xf32>
    %39 = tpu.matmul %38, %7, %cst_26 {dimension_numbers = #tpu.dot_dimension_numbers<[1], [0], [0], [1], [0, 0, 1, 1], [], []>} : vector<2x64xf32>, vector<64x128xf32>, vector<2x128xf32> -> vector<2x128xf32>
    %40 = vector.broadcast %8 : vector<1x128xf32> to vector<2x128xf32>
    %41 = arith.addf %39, %40 : vector<2x128xf32>
    %42 = vector.extract_strided_slice %41 {offsets = [0, 0], sizes = [2, 96], strides = [1, 1]} : vector<2x128xf32> to vector<2x96xf32>
    %cst_27 = arith.constant 5.000000e-01 : f32
    %43 = vector.broadcast %cst_27 : f32 to vector<2x96xf32>
    %44 = arith.mulf %43, %42 : vector<2x96xf32>
    %45 = math.tanh %44 : vector<2x96xf32>
    %cst_28 = arith.constant 1.000000e+00 : f32
    %46 = vector.broadcast %cst_28 : f32 to vector<2x96xf32>
    %47 = arith.addf %45, %46 : vector<2x96xf32>
    %cst_29 = arith.constant 5.000000e-01 : f32
    %48 = vector.broadcast %cst_29 : f32 to vector<2x96xf32>
    %49 = arith.mulf %48, %47 : vector<2x96xf32>
    %50 = vector.extract_strided_slice %49 {offsets = [0, 0], sizes = [2, 32], strides = [1, 1]} : vector<2x96xf32> to vector<2x32xf32>
    %51 = vector.extract_strided_slice %49 {offsets = [0, 32], sizes = [2, 32], strides = [1, 1]} : vector<2x96xf32> to vector<2x32xf32>
    %52 = vector.extract_strided_slice %49 {offsets = [0, 64], sizes = [2, 32], strides = [1, 1]} : vector<2x96xf32> to vector<2x32xf32>
    %53 = vector.extract_strided_slice %41 {offsets = [0, 96], sizes = [2, 32], strides = [1, 1]} : vector<2x128xf32> to vector<2x32xf32>
    %54 = math.tanh %53 : vector<2x32xf32>
    %55 = arith.mulf %51, %16 : vector<2x32xf32>
    %56 = arith.mulf %50, %54 : vector<2x32xf32>
    %57 = arith.addf %55, %56 : vector<2x32xf32>
    %58 = math.tanh %57 : vector<2x32xf32>
    %59 = arith.mulf %52, %58 : vector<2x32xf32>
    %60 = vector.extract_strided_slice %5 {offsets = [2, 0], sizes = [2, 128], strides = [1, 1]} : vector<16x128xf32> to vector<2x128xf32>
    %cst_30 = arith.constant dense<0.000000e+00> : vector<2x128xf32>
    %61 = tpu.matmul %37, %6, %cst_30 {dimension_numbers = #tpu.dot_dimension_numbers<[1], [0], [0], [1], [0, 0, 1, 1], [], []>} : vector<2x32xf32>, vector<32x128xf32>, vector<2x128xf32> -> vector<2x128xf32>
    %62 = arith.addf %60, %61 : vector<2x128xf32>
    %63 = vector.extract_strided_slice %62 {offsets = [0, 0], sizes = [2, 96], strides = [1, 1]} : vector<2x128xf32> to vector<2x96xf32>
    %cst_31 = arith.constant 5.000000e-01 : f32
    %64 = vector.broadcast %cst_31 : f32 to vector<2x96xf32>
    %65 = arith.mulf %64, %63 : vector<2x96xf32>
    %66 = math.tanh %65 : vector<2x96xf32>
    %cst_32 = arith.constant 1.000000e+00 : f32
    %67 = vector.broadcast %cst_32 : f32 to vector<2x96xf32>
    %68 = arith.addf %66, %67 : vector<2x96xf32>
    %cst_33 = arith.constant 5.000000e-01 : f32
    %69 = vector.broadcast %cst_33 : f32 to vector<2x96xf32>
    %70 = arith.mulf %69, %68 : vector<2x96xf32>
    %71 = vector.extract_strided_slice %70 {offsets = [0, 0], sizes = [2, 32], strides = [1, 1]} : vector<2x96xf32> to vector<2x32xf32>
    %72 = vector.extract_strided_slice %70 {offsets = [0, 32], sizes = [2, 32], strides = [1, 1]} : vector<2x96xf32> to vector<2x32xf32>
    %73 = vector.extract_strided_slice %70 {offsets = [0, 64], sizes = [2, 32], strides = [1, 1]} : vector<2x96xf32> to vector<2x32xf32>
    %74 = vector.extract_strided_slice %62 {offsets = [0, 96], sizes = [2, 32], strides = [1, 1]} : vector<2x128xf32> to vector<2x32xf32>
    %75 = math.tanh %74 : vector<2x32xf32>
    %76 = arith.mulf %72, %35 : vector<2x32xf32>
    %77 = arith.mulf %71, %75 : vector<2x32xf32>
    %78 = arith.addf %76, %77 : vector<2x32xf32>
    %79 = math.tanh %78 : vector<2x32xf32>
    %80 = arith.mulf %73, %79 : vector<2x32xf32>
    %81 = tpu.concatenate %80, %59 in 1 : vector<2x32xf32>, vector<2x32xf32> -> vector<2x64xf32>
    %cst_34 = arith.constant dense<0.000000e+00> : vector<2x128xf32>
    %82 = tpu.matmul %81, %7, %cst_34 {dimension_numbers = #tpu.dot_dimension_numbers<[1], [0], [0], [1], [0, 0, 1, 1], [], []>} : vector<2x64xf32>, vector<64x128xf32>, vector<2x128xf32> -> vector<2x128xf32>
    %83 = vector.broadcast %8 : vector<1x128xf32> to vector<2x128xf32>
    %84 = arith.addf %82, %83 : vector<2x128xf32>
    %85 = vector.extract_strided_slice %84 {offsets = [0, 0], sizes = [2, 96], strides = [1, 1]} : vector<2x128xf32> to vector<2x96xf32>
    %cst_35 = arith.constant 5.000000e-01 : f32
    %86 = vector.broadcast %cst_35 : f32 to vector<2x96xf32>
    %87 = arith.mulf %86, %85 : vector<2x96xf32>
    %88 = math.tanh %87 : vector<2x96xf32>
    %cst_36 = arith.constant 1.000000e+00 : f32
    %89 = vector.broadcast %cst_36 : f32 to vector<2x96xf32>
    %90 = arith.addf %88, %89 : vector<2x96xf32>
    %cst_37 = arith.constant 5.000000e-01 : f32
    %91 = vector.broadcast %cst_37 : f32 to vector<2x96xf32>
    %92 = arith.mulf %91, %90 : vector<2x96xf32>
    %93 = vector.extract_strided_slice %92 {offsets = [0, 0], sizes = [2, 32], strides = [1, 1]} : vector<2x96xf32> to vector<2x32xf32>
    %94 = vector.extract_strided_slice %92 {offsets = [0, 32], sizes = [2, 32], strides = [1, 1]} : vector<2x96xf32> to vector<2x32xf32>
    %95 = vector.extract_strided_slice %92 {offsets = [0, 64], sizes = [2, 32], strides = [1, 1]} : vector<2x96xf32> to vector<2x32xf32>
    %96 = vector.extract_strided_slice %84 {offsets = [0, 96], sizes = [2, 32], strides = [1, 1]} : vector<2x128xf32> to vector<2x32xf32>
    %97 = math.tanh %96 : vector<2x32xf32>
    %98 = arith.mulf %94, %57 : vector<2x32xf32>
    %99 = arith.mulf %93, %97 : vector<2x32xf32>
    %100 = arith.addf %98, %99 : vector<2x32xf32>
    %101 = math.tanh %100 : vector<2x32xf32>
    %102 = arith.mulf %95, %101 : vector<2x32xf32>
    %103 = vector.extract_strided_slice %5 {offsets = [4, 0], sizes = [2, 128], strides = [1, 1]} : vector<16x128xf32> to vector<2x128xf32>
    %cst_38 = arith.constant dense<0.000000e+00> : vector<2x128xf32>
    %104 = tpu.matmul %80, %6, %cst_38 {dimension_numbers = #tpu.dot_dimension_numbers<[1], [0], [0], [1], [0, 0, 1, 1], [], []>} : vector<2x32xf32>, vector<32x128xf32>, vector<2x128xf32> -> vector<2x128xf32>
    %105 = arith.addf %103, %104 : vector<2x128xf32>
    %106 = vector.extract_strided_slice %105 {offsets = [0, 0], sizes = [2, 96], strides = [1, 1]} : vector<2x128xf32> to vector<2x96xf32>
    %cst_39 = arith.constant 5.000000e-01 : f32
    %107 = vector.broadcast %cst_39 : f32 to vector<2x96xf32>
    %108 = arith.mulf %107, %106 : vector<2x96xf32>
    %109 = math.tanh %108 : vector<2x96xf32>
    %cst_40 = arith.constant 1.000000e+00 : f32
    %110 = vector.broadcast %cst_40 : f32 to vector<2x96xf32>
    %111 = arith.addf %109, %110 : vector<2x96xf32>
    %cst_41 = arith.constant 5.000000e-01 : f32
    %112 = vector.broadcast %cst_41 : f32 to vector<2x96xf32>
    %113 = arith.mulf %112, %111 : vector<2x96xf32>
    %114 = vector.extract_strided_slice %113 {offsets = [0, 0], sizes = [2, 32], strides = [1, 1]} : vector<2x96xf32> to vector<2x32xf32>
    %115 = vector.extract_strided_slice %113 {offsets = [0, 32], sizes = [2, 32], strides = [1, 1]} : vector<2x96xf32> to vector<2x32xf32>
    %116 = vector.extract_strided_slice %113 {offsets = [0, 64], sizes = [2, 32], strides = [1, 1]} : vector<2x96xf32> to vector<2x32xf32>
    %117 = vector.extract_strided_slice %105 {offsets = [0, 96], sizes = [2, 32], strides = [1, 1]} : vector<2x128xf32> to vector<2x32xf32>
    %118 = math.tanh %117 : vector<2x32xf32>
    %119 = arith.mulf %115, %78 : vector<2x32xf32>
    %120 = arith.mulf %114, %118 : vector<2x32xf32>
    %121 = arith.addf %119, %120 : vector<2x32xf32>
    %122 = math.tanh %121 : vector<2x32xf32>
    %123 = arith.mulf %116, %122 : vector<2x32xf32>
    %124 = tpu.concatenate %123, %102 in 1 : vector<2x32xf32>, vector<2x32xf32> -> vector<2x64xf32>
    %cst_42 = arith.constant dense<0.000000e+00> : vector<2x128xf32>
    %125 = tpu.matmul %124, %7, %cst_42 {dimension_numbers = #tpu.dot_dimension_numbers<[1], [0], [0], [1], [0, 0, 1, 1], [], []>} : vector<2x64xf32>, vector<64x128xf32>, vector<2x128xf32> -> vector<2x128xf32>
    %126 = vector.broadcast %8 : vector<1x128xf32> to vector<2x128xf32>
    %127 = arith.addf %125, %126 : vector<2x128xf32>
    %128 = vector.extract_strided_slice %127 {offsets = [0, 0], sizes = [2, 96], strides = [1, 1]} : vector<2x128xf32> to vector<2x96xf32>
    %cst_43 = arith.constant 5.000000e-01 : f32
    %129 = vector.broadcast %cst_43 : f32 to vector<2x96xf32>
    %130 = arith.mulf %129, %128 : vector<2x96xf32>
    %131 = math.tanh %130 : vector<2x96xf32>
    %cst_44 = arith.constant 1.000000e+00 : f32
    %132 = vector.broadcast %cst_44 : f32 to vector<2x96xf32>
    %133 = arith.addf %131, %132 : vector<2x96xf32>
    %cst_45 = arith.constant 5.000000e-01 : f32
    %134 = vector.broadcast %cst_45 : f32 to vector<2x96xf32>
    %135 = arith.mulf %134, %133 : vector<2x96xf32>
    %136 = vector.extract_strided_slice %135 {offsets = [0, 0], sizes = [2, 32], strides = [1, 1]} : vector<2x96xf32> to vector<2x32xf32>
    %137 = vector.extract_strided_slice %135 {offsets = [0, 32], sizes = [2, 32], strides = [1, 1]} : vector<2x96xf32> to vector<2x32xf32>
    %138 = vector.extract_strided_slice %135 {offsets = [0, 64], sizes = [2, 32], strides = [1, 1]} : vector<2x96xf32> to vector<2x32xf32>
    %139 = vector.extract_strided_slice %127 {offsets = [0, 96], sizes = [2, 32], strides = [1, 1]} : vector<2x128xf32> to vector<2x32xf32>
    %140 = math.tanh %139 : vector<2x32xf32>
    %141 = arith.mulf %137, %100 : vector<2x32xf32>
    %142 = arith.mulf %136, %140 : vector<2x32xf32>
    %143 = arith.addf %141, %142 : vector<2x32xf32>
    %144 = math.tanh %143 : vector<2x32xf32>
    %145 = arith.mulf %138, %144 : vector<2x32xf32>
    %146 = vector.extract_strided_slice %5 {offsets = [6, 0], sizes = [2, 128], strides = [1, 1]} : vector<16x128xf32> to vector<2x128xf32>
    %cst_46 = arith.constant dense<0.000000e+00> : vector<2x128xf32>
    %147 = tpu.matmul %123, %6, %cst_46 {dimension_numbers = #tpu.dot_dimension_numbers<[1], [0], [0], [1], [0, 0, 1, 1], [], []>} : vector<2x32xf32>, vector<32x128xf32>, vector<2x128xf32> -> vector<2x128xf32>
    %148 = arith.addf %146, %147 : vector<2x128xf32>
    %149 = vector.extract_strided_slice %148 {offsets = [0, 0], sizes = [2, 96], strides = [1, 1]} : vector<2x128xf32> to vector<2x96xf32>
    %cst_47 = arith.constant 5.000000e-01 : f32
    %150 = vector.broadcast %cst_47 : f32 to vector<2x96xf32>
    %151 = arith.mulf %150, %149 : vector<2x96xf32>
    %152 = math.tanh %151 : vector<2x96xf32>
    %cst_48 = arith.constant 1.000000e+00 : f32
    %153 = vector.broadcast %cst_48 : f32 to vector<2x96xf32>
    %154 = arith.addf %152, %153 : vector<2x96xf32>
    %cst_49 = arith.constant 5.000000e-01 : f32
    %155 = vector.broadcast %cst_49 : f32 to vector<2x96xf32>
    %156 = arith.mulf %155, %154 : vector<2x96xf32>
    %157 = vector.extract_strided_slice %156 {offsets = [0, 0], sizes = [2, 32], strides = [1, 1]} : vector<2x96xf32> to vector<2x32xf32>
    %158 = vector.extract_strided_slice %156 {offsets = [0, 32], sizes = [2, 32], strides = [1, 1]} : vector<2x96xf32> to vector<2x32xf32>
    %159 = vector.extract_strided_slice %156 {offsets = [0, 64], sizes = [2, 32], strides = [1, 1]} : vector<2x96xf32> to vector<2x32xf32>
    %160 = vector.extract_strided_slice %148 {offsets = [0, 96], sizes = [2, 32], strides = [1, 1]} : vector<2x128xf32> to vector<2x32xf32>
    %161 = math.tanh %160 : vector<2x32xf32>
    %162 = arith.mulf %158, %121 : vector<2x32xf32>
    %163 = arith.mulf %157, %161 : vector<2x32xf32>
    %164 = arith.addf %162, %163 : vector<2x32xf32>
    %165 = math.tanh %164 : vector<2x32xf32>
    %166 = arith.mulf %159, %165 : vector<2x32xf32>
    %167 = tpu.concatenate %166, %145 in 1 : vector<2x32xf32>, vector<2x32xf32> -> vector<2x64xf32>
    %cst_50 = arith.constant dense<0.000000e+00> : vector<2x128xf32>
    %168 = tpu.matmul %167, %7, %cst_50 {dimension_numbers = #tpu.dot_dimension_numbers<[1], [0], [0], [1], [0, 0, 1, 1], [], []>} : vector<2x64xf32>, vector<64x128xf32>, vector<2x128xf32> -> vector<2x128xf32>
    %169 = vector.broadcast %8 : vector<1x128xf32> to vector<2x128xf32>
    %170 = arith.addf %168, %169 : vector<2x128xf32>
    %171 = vector.extract_strided_slice %170 {offsets = [0, 0], sizes = [2, 96], strides = [1, 1]} : vector<2x128xf32> to vector<2x96xf32>
    %cst_51 = arith.constant 5.000000e-01 : f32
    %172 = vector.broadcast %cst_51 : f32 to vector<2x96xf32>
    %173 = arith.mulf %172, %171 : vector<2x96xf32>
    %174 = math.tanh %173 : vector<2x96xf32>
    %cst_52 = arith.constant 1.000000e+00 : f32
    %175 = vector.broadcast %cst_52 : f32 to vector<2x96xf32>
    %176 = arith.addf %174, %175 : vector<2x96xf32>
    %cst_53 = arith.constant 5.000000e-01 : f32
    %177 = vector.broadcast %cst_53 : f32 to vector<2x96xf32>
    %178 = arith.mulf %177, %176 : vector<2x96xf32>
    %179 = vector.extract_strided_slice %178 {offsets = [0, 0], sizes = [2, 32], strides = [1, 1]} : vector<2x96xf32> to vector<2x32xf32>
    %180 = vector.extract_strided_slice %178 {offsets = [0, 32], sizes = [2, 32], strides = [1, 1]} : vector<2x96xf32> to vector<2x32xf32>
    %181 = vector.extract_strided_slice %178 {offsets = [0, 64], sizes = [2, 32], strides = [1, 1]} : vector<2x96xf32> to vector<2x32xf32>
    %182 = vector.extract_strided_slice %170 {offsets = [0, 96], sizes = [2, 32], strides = [1, 1]} : vector<2x128xf32> to vector<2x32xf32>
    %183 = math.tanh %182 : vector<2x32xf32>
    %184 = arith.mulf %180, %143 : vector<2x32xf32>
    %185 = arith.mulf %179, %183 : vector<2x32xf32>
    %186 = arith.addf %184, %185 : vector<2x32xf32>
    %187 = math.tanh %186 : vector<2x32xf32>
    %188 = arith.mulf %181, %187 : vector<2x32xf32>
    %189 = vector.extract_strided_slice %5 {offsets = [8, 0], sizes = [2, 128], strides = [1, 1]} : vector<16x128xf32> to vector<2x128xf32>
    %cst_54 = arith.constant dense<0.000000e+00> : vector<2x128xf32>
    %190 = tpu.matmul %166, %6, %cst_54 {dimension_numbers = #tpu.dot_dimension_numbers<[1], [0], [0], [1], [0, 0, 1, 1], [], []>} : vector<2x32xf32>, vector<32x128xf32>, vector<2x128xf32> -> vector<2x128xf32>
    %191 = arith.addf %189, %190 : vector<2x128xf32>
    %192 = vector.extract_strided_slice %191 {offsets = [0, 0], sizes = [2, 96], strides = [1, 1]} : vector<2x128xf32> to vector<2x96xf32>
    %cst_55 = arith.constant 5.000000e-01 : f32
    %193 = vector.broadcast %cst_55 : f32 to vector<2x96xf32>
    %194 = arith.mulf %193, %192 : vector<2x96xf32>
    %195 = math.tanh %194 : vector<2x96xf32>
    %cst_56 = arith.constant 1.000000e+00 : f32
    %196 = vector.broadcast %cst_56 : f32 to vector<2x96xf32>
    %197 = arith.addf %195, %196 : vector<2x96xf32>
    %cst_57 = arith.constant 5.000000e-01 : f32
    %198 = vector.broadcast %cst_57 : f32 to vector<2x96xf32>
    %199 = arith.mulf %198, %197 : vector<2x96xf32>
    %200 = vector.extract_strided_slice %199 {offsets = [0, 0], sizes = [2, 32], strides = [1, 1]} : vector<2x96xf32> to vector<2x32xf32>
    %201 = vector.extract_strided_slice %199 {offsets = [0, 32], sizes = [2, 32], strides = [1, 1]} : vector<2x96xf32> to vector<2x32xf32>
    %202 = vector.extract_strided_slice %199 {offsets = [0, 64], sizes = [2, 32], strides = [1, 1]} : vector<2x96xf32> to vector<2x32xf32>
    %203 = vector.extract_strided_slice %191 {offsets = [0, 96], sizes = [2, 32], strides = [1, 1]} : vector<2x128xf32> to vector<2x32xf32>
    %204 = math.tanh %203 : vector<2x32xf32>
    %205 = arith.mulf %201, %164 : vector<2x32xf32>
    %206 = arith.mulf %200, %204 : vector<2x32xf32>
    %207 = arith.addf %205, %206 : vector<2x32xf32>
    %208 = math.tanh %207 : vector<2x32xf32>
    %209 = arith.mulf %202, %208 : vector<2x32xf32>
    %210 = tpu.concatenate %209, %188 in 1 : vector<2x32xf32>, vector<2x32xf32> -> vector<2x64xf32>
    %cst_58 = arith.constant dense<0.000000e+00> : vector<2x128xf32>
    %211 = tpu.matmul %210, %7, %cst_58 {dimension_numbers = #tpu.dot_dimension_numbers<[1], [0], [0], [1], [0, 0, 1, 1], [], []>} : vector<2x64xf32>, vector<64x128xf32>, vector<2x128xf32> -> vector<2x128xf32>
    %212 = vector.broadcast %8 : vector<1x128xf32> to vector<2x128xf32>
    %213 = arith.addf %211, %212 : vector<2x128xf32>
    %214 = vector.extract_strided_slice %213 {offsets = [0, 0], sizes = [2, 96], strides = [1, 1]} : vector<2x128xf32> to vector<2x96xf32>
    %cst_59 = arith.constant 5.000000e-01 : f32
    %215 = vector.broadcast %cst_59 : f32 to vector<2x96xf32>
    %216 = arith.mulf %215, %214 : vector<2x96xf32>
    %217 = math.tanh %216 : vector<2x96xf32>
    %cst_60 = arith.constant 1.000000e+00 : f32
    %218 = vector.broadcast %cst_60 : f32 to vector<2x96xf32>
    %219 = arith.addf %217, %218 : vector<2x96xf32>
    %cst_61 = arith.constant 5.000000e-01 : f32
    %220 = vector.broadcast %cst_61 : f32 to vector<2x96xf32>
    %221 = arith.mulf %220, %219 : vector<2x96xf32>
    %222 = vector.extract_strided_slice %221 {offsets = [0, 0], sizes = [2, 32], strides = [1, 1]} : vector<2x96xf32> to vector<2x32xf32>
    %223 = vector.extract_strided_slice %221 {offsets = [0, 32], sizes = [2, 32], strides = [1, 1]} : vector<2x96xf32> to vector<2x32xf32>
    %224 = vector.extract_strided_slice %221 {offsets = [0, 64], sizes = [2, 32], strides = [1, 1]} : vector<2x96xf32> to vector<2x32xf32>
    %225 = vector.extract_strided_slice %213 {offsets = [0, 96], sizes = [2, 32], strides = [1, 1]} : vector<2x128xf32> to vector<2x32xf32>
    %226 = math.tanh %225 : vector<2x32xf32>
    %227 = arith.mulf %223, %186 : vector<2x32xf32>
    %228 = arith.mulf %222, %226 : vector<2x32xf32>
    %229 = arith.addf %227, %228 : vector<2x32xf32>
    %230 = math.tanh %229 : vector<2x32xf32>
    %231 = arith.mulf %224, %230 : vector<2x32xf32>
    %232 = vector.extract_strided_slice %5 {offsets = [10, 0], sizes = [2, 128], strides = [1, 1]} : vector<16x128xf32> to vector<2x128xf32>
    %cst_62 = arith.constant dense<0.000000e+00> : vector<2x128xf32>
    %233 = tpu.matmul %209, %6, %cst_62 {dimension_numbers = #tpu.dot_dimension_numbers<[1], [0], [0], [1], [0, 0, 1, 1], [], []>} : vector<2x32xf32>, vector<32x128xf32>, vector<2x128xf32> -> vector<2x128xf32>
    %234 = arith.addf %232, %233 : vector<2x128xf32>
    %235 = vector.extract_strided_slice %234 {offsets = [0, 0], sizes = [2, 96], strides = [1, 1]} : vector<2x128xf32> to vector<2x96xf32>
    %cst_63 = arith.constant 5.000000e-01 : f32
    %236 = vector.broadcast %cst_63 : f32 to vector<2x96xf32>
    %237 = arith.mulf %236, %235 : vector<2x96xf32>
    %238 = math.tanh %237 : vector<2x96xf32>
    %cst_64 = arith.constant 1.000000e+00 : f32
    %239 = vector.broadcast %cst_64 : f32 to vector<2x96xf32>
    %240 = arith.addf %238, %239 : vector<2x96xf32>
    %cst_65 = arith.constant 5.000000e-01 : f32
    %241 = vector.broadcast %cst_65 : f32 to vector<2x96xf32>
    %242 = arith.mulf %241, %240 : vector<2x96xf32>
    %243 = vector.extract_strided_slice %242 {offsets = [0, 0], sizes = [2, 32], strides = [1, 1]} : vector<2x96xf32> to vector<2x32xf32>
    %244 = vector.extract_strided_slice %242 {offsets = [0, 32], sizes = [2, 32], strides = [1, 1]} : vector<2x96xf32> to vector<2x32xf32>
    %245 = vector.extract_strided_slice %242 {offsets = [0, 64], sizes = [2, 32], strides = [1, 1]} : vector<2x96xf32> to vector<2x32xf32>
    %246 = vector.extract_strided_slice %234 {offsets = [0, 96], sizes = [2, 32], strides = [1, 1]} : vector<2x128xf32> to vector<2x32xf32>
    %247 = math.tanh %246 : vector<2x32xf32>
    %248 = arith.mulf %244, %207 : vector<2x32xf32>
    %249 = arith.mulf %243, %247 : vector<2x32xf32>
    %250 = arith.addf %248, %249 : vector<2x32xf32>
    %251 = math.tanh %250 : vector<2x32xf32>
    %252 = arith.mulf %245, %251 : vector<2x32xf32>
    %253 = tpu.concatenate %252, %231 in 1 : vector<2x32xf32>, vector<2x32xf32> -> vector<2x64xf32>
    %cst_66 = arith.constant dense<0.000000e+00> : vector<2x128xf32>
    %254 = tpu.matmul %253, %7, %cst_66 {dimension_numbers = #tpu.dot_dimension_numbers<[1], [0], [0], [1], [0, 0, 1, 1], [], []>} : vector<2x64xf32>, vector<64x128xf32>, vector<2x128xf32> -> vector<2x128xf32>
    %255 = vector.broadcast %8 : vector<1x128xf32> to vector<2x128xf32>
    %256 = arith.addf %254, %255 : vector<2x128xf32>
    %257 = vector.extract_strided_slice %256 {offsets = [0, 0], sizes = [2, 96], strides = [1, 1]} : vector<2x128xf32> to vector<2x96xf32>
    %cst_67 = arith.constant 5.000000e-01 : f32
    %258 = vector.broadcast %cst_67 : f32 to vector<2x96xf32>
    %259 = arith.mulf %258, %257 : vector<2x96xf32>
    %260 = math.tanh %259 : vector<2x96xf32>
    %cst_68 = arith.constant 1.000000e+00 : f32
    %261 = vector.broadcast %cst_68 : f32 to vector<2x96xf32>
    %262 = arith.addf %260, %261 : vector<2x96xf32>
    %cst_69 = arith.constant 5.000000e-01 : f32
    %263 = vector.broadcast %cst_69 : f32 to vector<2x96xf32>
    %264 = arith.mulf %263, %262 : vector<2x96xf32>
    %265 = vector.extract_strided_slice %264 {offsets = [0, 0], sizes = [2, 32], strides = [1, 1]} : vector<2x96xf32> to vector<2x32xf32>
    %266 = vector.extract_strided_slice %264 {offsets = [0, 32], sizes = [2, 32], strides = [1, 1]} : vector<2x96xf32> to vector<2x32xf32>
    %267 = vector.extract_strided_slice %264 {offsets = [0, 64], sizes = [2, 32], strides = [1, 1]} : vector<2x96xf32> to vector<2x32xf32>
    %268 = vector.extract_strided_slice %256 {offsets = [0, 96], sizes = [2, 32], strides = [1, 1]} : vector<2x128xf32> to vector<2x32xf32>
    %269 = math.tanh %268 : vector<2x32xf32>
    %270 = arith.mulf %266, %229 : vector<2x32xf32>
    %271 = arith.mulf %265, %269 : vector<2x32xf32>
    %272 = arith.addf %270, %271 : vector<2x32xf32>
    %273 = math.tanh %272 : vector<2x32xf32>
    %274 = arith.mulf %267, %273 : vector<2x32xf32>
    %275 = vector.extract_strided_slice %5 {offsets = [12, 0], sizes = [2, 128], strides = [1, 1]} : vector<16x128xf32> to vector<2x128xf32>
    %cst_70 = arith.constant dense<0.000000e+00> : vector<2x128xf32>
    %276 = tpu.matmul %252, %6, %cst_70 {dimension_numbers = #tpu.dot_dimension_numbers<[1], [0], [0], [1], [0, 0, 1, 1], [], []>} : vector<2x32xf32>, vector<32x128xf32>, vector<2x128xf32> -> vector<2x128xf32>
    %277 = arith.addf %275, %276 : vector<2x128xf32>
    %278 = vector.extract_strided_slice %277 {offsets = [0, 0], sizes = [2, 96], strides = [1, 1]} : vector<2x128xf32> to vector<2x96xf32>
    %cst_71 = arith.constant 5.000000e-01 : f32
    %279 = vector.broadcast %cst_71 : f32 to vector<2x96xf32>
    %280 = arith.mulf %279, %278 : vector<2x96xf32>
    %281 = math.tanh %280 : vector<2x96xf32>
    %cst_72 = arith.constant 1.000000e+00 : f32
    %282 = vector.broadcast %cst_72 : f32 to vector<2x96xf32>
    %283 = arith.addf %281, %282 : vector<2x96xf32>
    %cst_73 = arith.constant 5.000000e-01 : f32
    %284 = vector.broadcast %cst_73 : f32 to vector<2x96xf32>
    %285 = arith.mulf %284, %283 : vector<2x96xf32>
    %286 = vector.extract_strided_slice %285 {offsets = [0, 0], sizes = [2, 32], strides = [1, 1]} : vector<2x96xf32> to vector<2x32xf32>
    %287 = vector.extract_strided_slice %285 {offsets = [0, 32], sizes = [2, 32], strides = [1, 1]} : vector<2x96xf32> to vector<2x32xf32>
    %288 = vector.extract_strided_slice %285 {offsets = [0, 64], sizes = [2, 32], strides = [1, 1]} : vector<2x96xf32> to vector<2x32xf32>
    %289 = vector.extract_strided_slice %277 {offsets = [0, 96], sizes = [2, 32], strides = [1, 1]} : vector<2x128xf32> to vector<2x32xf32>
    %290 = math.tanh %289 : vector<2x32xf32>
    %291 = arith.mulf %287, %250 : vector<2x32xf32>
    %292 = arith.mulf %286, %290 : vector<2x32xf32>
    %293 = arith.addf %291, %292 : vector<2x32xf32>
    %294 = math.tanh %293 : vector<2x32xf32>
    %295 = arith.mulf %288, %294 : vector<2x32xf32>
    %296 = tpu.concatenate %295, %274 in 1 : vector<2x32xf32>, vector<2x32xf32> -> vector<2x64xf32>
    %cst_74 = arith.constant dense<0.000000e+00> : vector<2x128xf32>
    %297 = tpu.matmul %296, %7, %cst_74 {dimension_numbers = #tpu.dot_dimension_numbers<[1], [0], [0], [1], [0, 0, 1, 1], [], []>} : vector<2x64xf32>, vector<64x128xf32>, vector<2x128xf32> -> vector<2x128xf32>
    %298 = vector.broadcast %8 : vector<1x128xf32> to vector<2x128xf32>
    %299 = arith.addf %297, %298 : vector<2x128xf32>
    %300 = vector.extract_strided_slice %299 {offsets = [0, 0], sizes = [2, 96], strides = [1, 1]} : vector<2x128xf32> to vector<2x96xf32>
    %cst_75 = arith.constant 5.000000e-01 : f32
    %301 = vector.broadcast %cst_75 : f32 to vector<2x96xf32>
    %302 = arith.mulf %301, %300 : vector<2x96xf32>
    %303 = math.tanh %302 : vector<2x96xf32>
    %cst_76 = arith.constant 1.000000e+00 : f32
    %304 = vector.broadcast %cst_76 : f32 to vector<2x96xf32>
    %305 = arith.addf %303, %304 : vector<2x96xf32>
    %cst_77 = arith.constant 5.000000e-01 : f32
    %306 = vector.broadcast %cst_77 : f32 to vector<2x96xf32>
    %307 = arith.mulf %306, %305 : vector<2x96xf32>
    %308 = vector.extract_strided_slice %307 {offsets = [0, 0], sizes = [2, 32], strides = [1, 1]} : vector<2x96xf32> to vector<2x32xf32>
    %309 = vector.extract_strided_slice %307 {offsets = [0, 32], sizes = [2, 32], strides = [1, 1]} : vector<2x96xf32> to vector<2x32xf32>
    %310 = vector.extract_strided_slice %307 {offsets = [0, 64], sizes = [2, 32], strides = [1, 1]} : vector<2x96xf32> to vector<2x32xf32>
    %311 = vector.extract_strided_slice %299 {offsets = [0, 96], sizes = [2, 32], strides = [1, 1]} : vector<2x128xf32> to vector<2x32xf32>
    %312 = math.tanh %311 : vector<2x32xf32>
    %313 = arith.mulf %309, %272 : vector<2x32xf32>
    %314 = arith.mulf %308, %312 : vector<2x32xf32>
    %315 = arith.addf %313, %314 : vector<2x32xf32>
    %316 = math.tanh %315 : vector<2x32xf32>
    %317 = arith.mulf %310, %316 : vector<2x32xf32>
    %318 = vector.extract_strided_slice %5 {offsets = [14, 0], sizes = [2, 128], strides = [1, 1]} : vector<16x128xf32> to vector<2x128xf32>
    %cst_78 = arith.constant dense<0.000000e+00> : vector<2x128xf32>
    %319 = tpu.matmul %295, %6, %cst_78 {dimension_numbers = #tpu.dot_dimension_numbers<[1], [0], [0], [1], [0, 0, 1, 1], [], []>} : vector<2x32xf32>, vector<32x128xf32>, vector<2x128xf32> -> vector<2x128xf32>
    %320 = arith.addf %318, %319 : vector<2x128xf32>
    %321 = vector.extract_strided_slice %320 {offsets = [0, 0], sizes = [2, 96], strides = [1, 1]} : vector<2x128xf32> to vector<2x96xf32>
    %cst_79 = arith.constant 5.000000e-01 : f32
    %322 = vector.broadcast %cst_79 : f32 to vector<2x96xf32>
    %323 = arith.mulf %322, %321 : vector<2x96xf32>
    %324 = math.tanh %323 : vector<2x96xf32>
    %cst_80 = arith.constant 1.000000e+00 : f32
    %325 = vector.broadcast %cst_80 : f32 to vector<2x96xf32>
    %326 = arith.addf %324, %325 : vector<2x96xf32>
    %cst_81 = arith.constant 5.000000e-01 : f32
    %327 = vector.broadcast %cst_81 : f32 to vector<2x96xf32>
    %328 = arith.mulf %327, %326 : vector<2x96xf32>
    %329 = vector.extract_strided_slice %328 {offsets = [0, 0], sizes = [2, 32], strides = [1, 1]} : vector<2x96xf32> to vector<2x32xf32>
    %330 = vector.extract_strided_slice %328 {offsets = [0, 32], sizes = [2, 32], strides = [1, 1]} : vector<2x96xf32> to vector<2x32xf32>
    %331 = vector.extract_strided_slice %328 {offsets = [0, 64], sizes = [2, 32], strides = [1, 1]} : vector<2x96xf32> to vector<2x32xf32>
    %332 = vector.extract_strided_slice %320 {offsets = [0, 96], sizes = [2, 32], strides = [1, 1]} : vector<2x128xf32> to vector<2x32xf32>
    %333 = math.tanh %332 : vector<2x32xf32>
    %334 = arith.mulf %330, %293 : vector<2x32xf32>
    %335 = arith.mulf %329, %333 : vector<2x32xf32>
    %336 = arith.addf %334, %335 : vector<2x32xf32>
    %337 = math.tanh %336 : vector<2x32xf32>
    %338 = arith.mulf %331, %337 : vector<2x32xf32>
    %339 = tpu.concatenate %338, %317 in 1 : vector<2x32xf32>, vector<2x32xf32> -> vector<2x64xf32>
    %cst_82 = arith.constant dense<0.000000e+00> : vector<2x128xf32>
    %340 = tpu.matmul %339, %7, %cst_82 {dimension_numbers = #tpu.dot_dimension_numbers<[1], [0], [0], [1], [0, 0, 1, 1], [], []>} : vector<2x64xf32>, vector<64x128xf32>, vector<2x128xf32> -> vector<2x128xf32>
    %341 = vector.broadcast %8 : vector<1x128xf32> to vector<2x128xf32>
    %342 = arith.addf %340, %341 : vector<2x128xf32>
    %343 = vector.extract_strided_slice %342 {offsets = [0, 0], sizes = [2, 96], strides = [1, 1]} : vector<2x128xf32> to vector<2x96xf32>
    %cst_83 = arith.constant 5.000000e-01 : f32
    %344 = vector.broadcast %cst_83 : f32 to vector<2x96xf32>
    %345 = arith.mulf %344, %343 : vector<2x96xf32>
    %346 = math.tanh %345 : vector<2x96xf32>
    %cst_84 = arith.constant 1.000000e+00 : f32
    %347 = vector.broadcast %cst_84 : f32 to vector<2x96xf32>
    %348 = arith.addf %346, %347 : vector<2x96xf32>
    %cst_85 = arith.constant 5.000000e-01 : f32
    %349 = vector.broadcast %cst_85 : f32 to vector<2x96xf32>
    %350 = arith.mulf %349, %348 : vector<2x96xf32>
    %351 = vector.extract_strided_slice %350 {offsets = [0, 0], sizes = [2, 32], strides = [1, 1]} : vector<2x96xf32> to vector<2x32xf32>
    %352 = vector.extract_strided_slice %350 {offsets = [0, 32], sizes = [2, 32], strides = [1, 1]} : vector<2x96xf32> to vector<2x32xf32>
    %353 = vector.extract_strided_slice %350 {offsets = [0, 64], sizes = [2, 32], strides = [1, 1]} : vector<2x96xf32> to vector<2x32xf32>
    %354 = vector.extract_strided_slice %342 {offsets = [0, 96], sizes = [2, 32], strides = [1, 1]} : vector<2x128xf32> to vector<2x32xf32>
    %355 = math.tanh %354 : vector<2x32xf32>
    %356 = arith.mulf %352, %315 : vector<2x32xf32>
    %357 = arith.mulf %351, %355 : vector<2x32xf32>
    %358 = arith.addf %356, %357 : vector<2x32xf32>
    %359 = math.tanh %358 : vector<2x32xf32>
    %360 = arith.mulf %353, %359 : vector<2x32xf32>
    %361 = tpu.concatenate %59, %102, %145, %188, %231, %274, %317, %360 in 0 : vector<2x32xf32>, vector<2x32xf32>, vector<2x32xf32>, vector<2x32xf32>, vector<2x32xf32>, vector<2x32xf32>, vector<2x32xf32>, vector<2x32xf32> -> vector<16x32xf32>
    %c0_86 = arith.constant 0 : index
    %c0_87 = arith.constant 0 : index
    %362 = vector.load %arg8[%c0_86, %c0_87] : memref<32x32xf32, #tpu.memory_space<vmem>>, vector<32x32xf32>
    %cst_88 = arith.constant dense<0.000000e+00> : vector<16x32xf32>
    %363 = tpu.matmul %361, %362, %cst_88 {dimension_numbers = #tpu.dot_dimension_numbers<[1], [0], [0], [1], [0, 0, 1, 1], [], []>} : vector<16x32xf32>, vector<32x32xf32>, vector<16x32xf32> -> vector<16x32xf32>
    %c0_89 = arith.constant 0 : index
    %c0_90 = arith.constant 0 : index
    %364 = vector.load %arg9[%c0_89, %c0_90] : memref<1x32xf32, #tpu.memory_space<vmem>>, vector<1x32xf32>
    %365 = vector.broadcast %364 : vector<1x32xf32> to vector<16x32xf32>
    %366 = arith.addf %363, %365 : vector<16x32xf32>
    %cst_91 = arith.constant 0.000000e+00 : f32
    %367 = vector.broadcast %cst_91 : f32 to vector<16x32xf32>
    %368 = arith.maximumf %366, %367 : vector<16x32xf32>
    %c0_92 = arith.constant 0 : index
    %c0_93 = arith.constant 0 : index
    %369 = vector.load %arg10[%c0_92, %c0_93] : memref<32x1xf32, #tpu.memory_space<vmem>>, vector<32x1xf32>
    %cst_94 = arith.constant dense<0.000000e+00> : vector<16x1xf32>
    %370 = tpu.matmul %368, %369, %cst_94 {dimension_numbers = #tpu.dot_dimension_numbers<[1], [0], [0], [1], [0, 0, 1, 1], [], []>} : vector<16x32xf32>, vector<32x1xf32>, vector<16x1xf32> -> vector<16x1xf32>
    %c0_95 = arith.constant 0 : index
    %c0_96 = arith.constant 0 : index
    %371 = vector.load %arg11[%c0_95, %c0_96] : memref<1x1xf32, #tpu.memory_space<vmem>>, vector<1x1xf32>
    %372 = vector.broadcast %371 : vector<1x1xf32> to vector<16x1xf32>
    %373 = arith.addf %370, %372 : vector<16x1xf32>
    %c0_97 = arith.constant 0 : index
    %c0_98 = arith.constant 0 : index
    %374 = vector.load %arg12[%c0_97, %c0_98] : memref<8x16xf32, #tpu.memory_space<vmem>>, vector<8x16xf32>
    %cst_99 = arith.constant dense<0.000000e+00> : vector<8x1xf32>
    %375 = tpu.matmul %374, %373, %cst_99 {dimension_numbers = #tpu.dot_dimension_numbers<[1], [0], [0], [1], [0, 0, 1, 1], [], []>} : vector<8x16xf32>, vector<16x1xf32>, vector<8x1xf32> -> vector<8x1xf32>
    %c0_100 = arith.constant 0 : index
    %c0_101 = arith.constant 0 : index
    %376 = vector.load %arg13[%c0_100, %c0_101] : memref<8x1xf32, #tpu.memory_space<vmem>>, vector<8x1xf32>
    %377 = arith.addf %375, %376 : vector<8x1xf32>
    %c0_102 = arith.constant 0 : index
    %c0_103 = arith.constant 0 : index
    %378 = vector.load %arg14[%c0_102, %c0_103] : memref<8x1xf32, #tpu.memory_space<vmem>>, vector<8x1xf32>
    tpu.vector_store %arg14[%c0_102, %c0_103], %377 {strides = array<i32>} : memref<8x1xf32, #tpu.memory_space<vmem>>, vector<8x1xf32>,
    return
  }
}

</mosaic_0001>

<bundles_post_ra>
// kernel: tile.8
= control target key start
LH: loop header
LB: loop body
LE: loop exit
PB: predicated region body
PF: predicated region fallthrough
CT: control target
= control target key end

     0   :  { %s22_s0 = inlined_call_operand.vmem [shape: f32[4], index: 0, kind: input, shape index: {}]   ;;  %s23_s1 = inlined_call_operand.vmem [shape: f32[2,1,1,4], index: 1, kind: output, shape index: {}]  }
   0x1   :  { %v4_v0 = vld [vmem:[%s22_s0] ss:$0 sm:$0xff] }
   0x2   :  { %5 = vst [vmem:[%s23_s1] sm:$0x3] %v4_v0 }

// kernel: tile.0
= control target key start
LH: loop header
LB: loop body
LE: loop exit
PB: predicated region body
PF: predicated region fallthrough
CT: control target
= control target key end

     0   :  { %s35_s8 = smov 125   ;;  %vm8_vm0 = vcmask 7168   ;;  %s36_s11 = smov 126   ;;  %s62_s0 = inlined_call_operand.vmem [shape: f32[2,1,1,4], index: 0, kind: input, shape index: {}]   ;;  %s63_s1 = inlined_call_operand.vmem [shape: f32[8,1], index: 1, kind: output, shape index: {}]  }
   0x1   :  { %v5_v0 = vld [vmem:[%s62_s0] sm:$0x3]  ;;  %s34_s0 = smov 127  }
   0x2   :  { %6 = vst [vmem:[#allocation0] sm:$0x3] %v5_v0 }
   0x9   :  { %v10_v1 = vld [vmem:[#allocation0] sm:$0x3]  }
   0xa   :  { %v22_v2 = vld [vmem:[#allocation0] sm:$0x3]   ;;  %11 = vrot.lane.b32.xlu0 %v10_v1, %s34_s0 }
   0xb   :  { %23 = vrot.lane.b32.xlu1 %v22_v2, %s35_s8  ;;  %v7_v3 = vld [vmem:[#allocation0] sm:$0x3]  }
   0xc   :  { %v16_v4 = vld [vmem:[#allocation0] sm:$0x3]   ;;  %9 = vst.msk [vmem:[%s63_s1] ss:$4 sm:$0x3] %vm8_vm0, %v7_v3  }
   0xe   :  { %17 = vrot.lane.b32.xlu0 %v16_v4, %s36_s11 }
  0x7c   :  { %v12_v5 = vpop.permute.xlu0 %11  }
  0x7d   :  { %v24_v6 = vpop.permute.xlu1 %23   ;;  %28 = vst.msk [vmem:[%s63_s1 + $0x1] ss:$4 sm:$0x3] %vm8_vm0, %v12_v5  }
  0x7e   :  { %30 = vst.msk [vmem:[%s63_s1 + $0x3] ss:$4 sm:$0x3] %vm8_vm0, %v24_v6  }
  0x80   :  { %v18_v7 = vpop.permute.xlu0 %17  }
  0x81   :  { %29 = vst.msk [vmem:[%s63_s1 + $0x2] ss:$4 sm:$0x3] %vm8_vm0, %v18_v7  }

// kernel: _my_lstm_pallas.1
= control target key start
LH: loop header
LB: loop body
LE: loop exit
PB: predicated region body
PF: predicated region fallthrough
CT: control target
= control target key end

     0   :  { %vm67_vm0 = vcmask 1043456   ;;  %v2684_v0 = vmov 0.0   ;;  %vm2685_vm1 = vmmov 0   ;;  %vm60_vm2 = vcmask 97280   ;;  %s2686_s15 = smov 32   ;;  %s3352_s1 = inlined_call_operand.vmem [shape: f32[12,128], index: 1, kind: input, shape index: {}]   ;;  %s3353_s2 = inlined_call_operand.vmem [shape: f32[32,128], index: 2, kind: input, shape index: {}]   ;;  %s3354_s0 = inlined_call_operand.vmem [shape: f32[16,12], index: 0, kind: input, shape index: {}]   ;;  %s3355_s6 = inlined_call_operand.vmem [shape: f32[2,2,32], index: 6, kind: input, shape index: {}]   ;;  %s3356_s3 = inlined_call_operand.vmem [shape: f32[1,128], index: 3, kind: input, shape index: {}]   ;;  %s3357_s7 = inlined_call_operand.vmem [shape: f32[2,2,32], index: 7, kind: input, shape index: {}]   ;;  %s3358_s4 = inlined_call_operand.vmem [shape: f32[64,128], index: 4, kind: input, shape index: {}]   ;;  %s3359_s5 = inlined_call_operand.vmem [shape: f32[1,128], index: 5, kind: input, shape index: {}]   ;;  %s3360_s8 = inlined_call_operand.vmem [shape: f32[32,32], index: 8, kind: input, shape index: {}]   ;;  %s3361_s10 = inlined_call_operand.vmem [shape: f32[32,1], index: 10, kind: input, shape index: {}]   ;;  %s3362_s11 = inlined_call_operand.<no memory space> [shape: f32[1,1], index: 11, kind: input, shape index: {}]   ;;  %s3363_s9 = inlined_call_operand.vmem [shape: f32[1,32], index: 9, kind: input, shape index: {}]   ;;  %s3364_s12 = inlined_call_operand.vmem [shape: f32[8,16], index: 12, kind: input, shape index: {}]   ;;  %s3365_s13 = inlined_call_operand.vmem [shape: f32[8,1], index: 13, kind: input, shape index: {}]   ;;  %s3366_s14 = inlined_call_operand.vmem [shape: f32[8,1], index: 14, kind: output, shape index: {}]  }
   0x1   :  { %2301 = vmatprep.subr.mxu1 %v2684_v0  ;;  %v52_v1 = vld [vmem:[%s3352_s1 + $0x8] sm:$0xf]  ;;  %v2771_v2 = vld [vmem:[%s3353_s2 + $0x18] sm:$0xff]  ;;  %v51_v3 = vld [vmem:[%s3352_s1] sm:$0xff]  ;;  %2309 = vmatprep.mubr.msk.f32.mxu1 %vm2685_vm1, %v2684_v0  ;;  %vm165_vm3 = vcmask 261120   ;;  %vm281_vm4 = vcmask 523264  }
   0x2   :  { %2294 = vmatprep.subr.msk.mxu0 %vm67_vm0, %v52_v1  ;;  %2302 = vmatpush3.msra.mxu1 %v2771_v2  ;;  %v2783_v4 = vld [vmem:[%s3353_s2 + $0x10] sm:$0xff]  ;;  %v49_v5 = vld [vmem:[%s3354_s0] sm:$0xff]  ;;  %v50_v6 = vld [vmem:[%s3354_s0 + $0x8] sm:$0xff]  ;;  %vm1853_vm5 = vcmask 1041408   ;;  %vm1856_vm6 = vcmask 1045504   ;;  %vm2053_vm7 = vcmask 130048  }
   0x3   :  { %2295 = vmatpush3.msk.msra.mxu0 %vm67_vm0, %v52_v1  ;;  %2303 = vmatprep.subr.mxu1 %v2684_v0  ;;  %v2797_v7 = vld [vmem:[%s3353_s2 + $0x8] sm:$0xff]  ;;  %v2803_v8 = vld [vmem:[%s3353_s2] sm:$0xff]  ;;  %v2846_v30 = vld [vmem:[%s3358_s4 + $0x38] sm:$0xff]  ;;  %vm2127_vm8 = vcmask 7168  }
   0x4   :  { %2296 = vmatprep.subr.mxu0 %v51_v3  ;;  %2304 = vmatpush3.msra.mxu1 %v2783_v4  ;;  %v159_v9 = vld [vmem:[%s3355_s6] sm:$0x3]  ;;  %v2851_v31 = vld [vmem:[%s3358_s4 + $0x30] sm:$0xff]  ;;  %v2858_v32 = vld [vmem:[%s3358_s4 + $0x28] sm:$0xff] }
   0x5   :  { %2297 = vmatpush3.msra.mxu0 %v51_v3  ;;  %2298 = vmatprep.mubr.msk.f32.mxu0 %vm60_vm2, %v49_v5  ;;  %v2133_v10 = vld [vmem:[%s3356_s3] ss:$0 sm:$0xff]  ;;  %v2872_v34 = vld [vmem:[%s3358_s4 + $0x18] sm:$0xff]  ;;  %v2879_v35 = vld [vmem:[%s3358_s4 + $0x10] sm:$0xff] }
   0x6   :  { %2305 = vmatprep.subr.mxu1 %v2684_v0  ;;  %2299 = vmatmul.mubr.msk.f32.vlgmr.msra.gmra.mxu0 %vm60_vm2, %v50_v6  ;;  %v160_v19 = vld [vmem:[%s3357_s7] sm:$0x3]  ;;  %v2887_v37 = vld [vmem:[%s3358_s4 + $0x8] sm:$0xff]  ;;  %v2137_v38 = vld [vmem:[%s3355_s6 + $0x2] sm:$0x3]  ;;  %s2687_s6 = smov 64  }
   0x7   :  { %2306 = vmatpush3.msra.mxu1 %v2797_v7  ;;  %2312 = vmatprep.subr.mxu0 %v2684_v0  ;;  %v2865_v33 = vld [vmem:[%s3358_s4 + $0x20] sm:$0xff] }
   0x8   :  { %2307 = vmatprep.subr.mxu1 %v2684_v0  ;;  %2328 = vmatprep.mubr.msk.f32.mxu0 %vm2685_vm1, %v2684_v0  ;;  %v2900_v39 = vld [vmem:[%s3358_s4] sm:$0xff] }
   0x9   :  { %2308 = vmatpush3.msra.mxu1 %v2803_v8  ;;  %2313 = vmatpush3.msra.mxu0 %v2846_v30  ;;  %v2939_v45 = vld [vmem:[%s3359_s5] ss:$0 sm:$0xff]  ;;  %v2138_v55 = vld [vmem:[%s3357_s7 + $0x2] sm:$0x3]  ;;  %s2688_s7 = smov 96  }
   0xa   :  { %2310 = vmatmul.mubr.msk.f32.vlgmr.msra.gmra.mxu1 %vm165_vm3, %v159_v9  ;;  %2331 = vmatprep.subr.mxu1 %v2684_v0 }
   0xb   :  { %2332 = vmatpush3.msra.mxu1 %v2771_v2  ;;  %2339 = vmatprep.mubr.msk.f32.mxu1 %vm2685_vm1, %v2684_v0 }
   0xc   :  { %2333 = vmatprep.subr.mxu1 %v2684_v0  ;;  %2314 = vmatprep.subr.mxu0 %v2684_v0 }
   0xd   :  { %2334 = vmatpush3.msra.mxu1 %v2783_v4  ;;  %2315 = vmatpush3.msra.mxu0 %v2851_v31 }
   0xe   :  { %2335 = vmatprep.subr.mxu1 %v2684_v0  ;;  %2316 = vmatprep.subr.mxu0 %v2684_v0 }
   0xf   :  { %2336 = vmatpush3.msra.mxu1 %v2797_v7  ;;  %2317 = vmatpush3.msra.mxu0 %v2858_v32 }
  0x10   :  { %2337 = vmatprep.subr.mxu1 %v2684_v0  ;;  %2318 = vmatprep.subr.mxu0 %v2684_v0 }
  0x11   :  { %2338 = vmatpush3.msra.mxu1 %v2803_v8  ;;  %2319 = vmatpush3.msra.mxu0 %v2865_v33 }
  0x12   :  { %2342 = vmatprep.subr.mxu1 %v2684_v0  ;;  %2320 = vmatprep.subr.mxu0 %v2684_v0 }
  0x13   :  { %2321 = vmatpush3.msra.mxu0 %v2872_v34 }
  0x14   :  { %2322 = vmatprep.subr.mxu0 %v2684_v0 }
  0x15   :  { %2323 = vmatpush3.msra.mxu0 %v2879_v35 }
  0x16   :  { %2324 = vmatprep.subr.mxu0 %v2684_v0 }
  0x17   :  { %2325 = vmatpush3.msra.mxu0 %v2887_v37 }
  0x18   :  { %2326 = vmatprep.subr.mxu0 %v2684_v0 }
  0x19   :  { %2327 = vmatpush3.msra.mxu0 %v2900_v39 }
  0x1a   :  { %2361 = vmatprep.subr.mxu0 %v2684_v0 }
  0xc6   :  { %v2300_v11 = vpop.f32.mrf.mxu0 }
  0xc7   :  { %v2829_v12 = vadd.f32 %v2300_v11, %v2133_v10 }
  0xc8   :  { %v137_v13 = vpop.f32.mrf.mxu0 }
  0xc9   :  { %v2831_v14 = vadd.f32 %v2133_v10, %v137_v13 }
  0xca   :  { %v235_v15 = vpop.f32.mrf.mxu1 }
  0xcb   :  { %v239_v16 = vadd.f32 %v235_v15, %v2831_v14 }
  0xcc   :  { %v2311_v17 = vpop.f32.mrf.mxu1 }
  0xcd   :  { %2575 = vtanh.f32 %v239_v16  ;;  %v240_v20 = vmul.f32 0.5, %v239_v16 }
  0xcf   :  { %2577 = vtanh.f32 %v240_v20 }
  0xda   :  { %v2576_v18 = vpop.eup %2575 }
  0xdb   :  { %251 = vrot.lane.b32.xlu0 %v2576_v18, %s2686_s15 }
  0xdc   :  { %v2578_v21 = vpop.eup %2577 }
  0xdd   :  { %v242_v22 = vadd.f32 1.0, %v2578_v21 }
  0xdf   :  { %246 = vrot.lane.b32.xlu0 %v160_v19, %s2686_s15  ;;  %v243_v23 = vmul.f32 0.5, %v242_v22 }
 0x14d   :  { %v252_v24 = vpop.permute.xlu0 %251 }
 0x14e   :  { %v254_v25 = vmul.f32 %v252_v24, %v243_v23 }
 0x150   :  { %256 = vrot.lane.b32.xlu1 %v254_v25, %s2686_s15 }
 0x151   :  { %v247_v26 = vpop.permute.xlu0 %246 }
 0x152   :  { %v249_v27 = vmul.f32 %v247_v26, %v243_v23 }
 0x1c2   :  { %v257_v28 = vpop.permute.xlu1 %256 }
 0x1c3   :  { %v2840_v29 = vadd.f32 %v257_v28, %v249_v27 }
 0x1c5   :  { %2579 = vtanh.f32 %v2840_v29  ;;  %v463_v10 = vrot.slane %v2840_v29, 6 }
 0x1d2   :  { %v2580_v36 = vpop.eup %2579 }
 0x1d3   :  { %262 = vrot.lane.b32.xlu1 %v2580_v36, %s2686_s15 }
 0x1d7   :  { %271 = vrot.lane.b32.xlu1 %v2137_v38, %s2686_s15 }
 0x245   :  { %v263_v40 = vpop.permute.xlu1 %262 }
 0x246   :  { %v265_v41 = vmul.f32 %v263_v40, %v243_v23 }
 0x248   :  { %267 = vrot.lane.b32.xlu0 %v265_v41, %s2687_s6 }
 0x249   :  { %v272_v42 = vpop.permute.xlu1 %271 }
 0x2ba   :  { %v268_v43 = vpop.permute.xlu0 %267 }
 0x2bb   :  { %v274_v44 = vsel %vm165_vm3, %v268_v43, %v272_v42  ;;  %2340 = vmatmul.mubr.msk.f32.vlgmr.msra.gmra.mxu1 %vm165_vm3, %v268_v43 }
 0x2bc   :  { %2329 = vmatmul.mubr.msk.f32.vlgmr.msra.gmra.mxu0 %vm281_vm4, %v274_v44  ;;  %2343 = vmatpush3.msra.mxu1 %v2846_v30 }
 0x2bd   :  { %2344 = vmatprep.subr.mxu1 %v2684_v0  ;;  %2362 = vmatpush3.msra.mxu0 %v2771_v2 }
 0x2be   :  { %2345 = vmatpush3.msra.mxu1 %v2851_v31  ;;  %2363 = vmatprep.subr.mxu0 %v2684_v0 }
 0x2bf   :  { %2346 = vmatprep.subr.mxu1 %v2684_v0  ;;  %2364 = vmatpush3.msra.mxu0 %v2783_v4 }
 0x2c0   :  { %2347 = vmatpush3.msra.mxu1 %v2858_v32  ;;  %2365 = vmatprep.subr.mxu0 %v2684_v0 }
 0x2c1   :  { %2348 = vmatprep.subr.mxu1 %v2684_v0  ;;  %2366 = vmatpush3.msra.mxu0 %v2797_v7 }
 0x2c2   :  { %2349 = vmatpush3.msra.mxu1 %v2865_v33  ;;  %2367 = vmatprep.subr.mxu0 %v2684_v0 }
 0x2c3   :  { %2350 = vmatprep.subr.mxu1 %v2684_v0  ;;  %2358 = vmatprep.mubr.msk.f32.mxu1 %vm2685_vm1, %v2684_v0 }
 0x2c4   :  { %2351 = vmatpush3.msra.mxu1 %v2872_v34  ;;  %2368 = vmatpush3.msra.mxu0 %v2803_v8 }
 0x2c5   :  { %2352 = vmatprep.subr.mxu1 %v2684_v0  ;;  %2369 = vmatprep.mubr.msk.f32.mxu0 %vm2685_vm1, %v2684_v0 }
 0x2c6   :  { %2353 = vmatpush3.msra.mxu1 %v2879_v35  ;;  %2372 = vmatprep.subr.mxu0 %v2684_v0 }
 0x2c7   :  { %2354 = vmatprep.subr.mxu1 %v2684_v0 }
 0x2c8   :  { %2355 = vmatpush3.msra.mxu1 %v2887_v37 }
 0x2c9   :  { %2356 = vmatprep.subr.mxu1 %v2684_v0 }
 0x2ca   :  { %2357 = vmatpush3.msra.mxu1 %v2900_v39 }
 0x2cb   :  { %2391 = vmatprep.subr.mxu1 %v2684_v0 }
 0x37b   :  { %v449_v46 = vpop.f32.mrf.mxu1 }
 0x37c   :  { %v454_v47 = vrot.slane %v449_v46, 6  ;;  %v351_v48 = vpop.f32.mrf.mxu0 }
 0x37d   :  { %v352_v49 = vadd.f32 %v2939_v45, %v351_v48  ;;  %v2341_v50 = vpop.f32.mrf.mxu1 }
 0x37e   :  { %v456_v51 = vadd.f32 %v454_v47, %v2831_v14  ;;  %v2330_v52 = vpop.f32.mrf.mxu0 }
 0x37f   :  { %2581 = vtanh.f32 %v352_v49  ;;  %v355_v56 = vmul.f32 0.5, %v352_v49 }
 0x380   :  { %2583 = vtanh.f32 %v456_v51  ;;  %v457_v57 = vmul.f32 0.5, %v456_v51 }
 0x381   :  { %2585 = vtanh.f32 %v355_v56 }
 0x382   :  { %2587 = vtanh.f32 %v457_v57 }
 0x38c   :  { %v2582_v53 = vpop.eup %2581 }
 0x38d   :  { %v2584_v54 = vpop.eup %2583  ;;  %366 = vrot.lane.b32.xlu0 %v2582_v53, %s2686_s15 }
 0x38e   :  { %467 = vrot.lane.b32.xlu1 %v2584_v54, %s2686_s15  ;;  %v2586_v58 = vpop.eup %2585 }
 0x38f   :  { %v2588_v59 = vpop.eup %2587  ;;  %v357_v60 = vadd.f32 1.0, %v2586_v58 }
 0x390   :  { %v459_v61 = vadd.f32 1.0, %v2588_v59 }
 0x391   :  { %361 = vrot.lane.b32.xlu0 %v2138_v55, %s2686_s15  ;;  %v358_v62 = vmul.f32 0.5, %v357_v60 }
 0x392   :  { %v460_v1 = vmul.f32 0.5, %v459_v61 }
 0x394   :  { %v465_v15 = vmul.f32 %v463_v10, %v460_v1 }
 0x3ff   :  { %v367_v63 = vpop.permute.xlu0 %366 }
 0x400   :  { %v369_v3 = vmul.f32 %v367_v63, %v358_v62  ;;  %v468_v5 = vpop.permute.xlu1 %467 }
 0x401   :  { %v470_v6 = vmul.f32 %v468_v5, %v460_v1 }
 0x402   :  { %371 = vrot.lane.b32.xlu1 %v369_v3, %s2686_s15 }
 0x403   :  { %472 = vrot.lane.b32.xlu0 %v470_v6, %s2686_s15  ;;  %v362_v9 = vpop.permute.xlu0 %361 }
 0x404   :  { %v364_v11 = vmul.f32 %v362_v9, %v358_v62 }
 0x474   :  { %v372_v13 = vpop.permute.xlu1 %371 }
 0x475   :  { %v2952_v16 = vadd.f32 %v372_v13, %v364_v11  ;;  %v473_v17 = vpop.permute.xlu0 %472 }
 0x476   :  { %v2954_v18 = vadd.f32 %v473_v17, %v465_v15 }
 0x477   :  { %2589 = vtanh.f32 %v2952_v16 }
 0x478   :  { %2591 = vtanh.f32 %v2954_v18  ;;  %v673_v63 = vrot.slane %v2954_v18, 6 }
 0x484   :  { %v2590_v19 = vpop.eup %2589 }
 0x485   :  { %v2592_v20 = vpop.eup %2591  ;;  %377 = vrot.lane.b32.xlu1 %v2590_v19, %s2686_s15 }
 0x486   :  { %478 = vrot.lane.b32.xlu0 %v2592_v20, %s2686_s15 }
 0x4f7   :  { %v378_v21 = vpop.permute.xlu1 %377 }
 0x4f8   :  { %v2960_v22 = vmul.f32 %v378_v21, %v358_v62  ;;  %v479_v23 = vpop.permute.xlu0 %478 }
 0x4f9   :  { %v481_v24 = vmul.f32 %v479_v23, %v460_v1 }
 0x4fa   :  { %v487_v25 = vrot.slane %v2960_v22, 6 }
 0x4fb   :  { %483 = vrot.lane.b32.xlu1 %v481_v24, %s2687_s6  ;;  %v588_v26 = vrot.slane %v481_v24, 2 }
 0x4fc   :  { %488 = vrot.lane.b32.xlu0 %v487_v25, %s2688_s7 }
 0x4ff   :  { %589 = vrot.lane.b32.xlu1 %v588_v26, %s2687_s6 }
 0x56d   :  { %v484_v27 = vpop.permute.xlu1 %483 }
 0x56e   :  { %v489_v28 = vpop.permute.xlu0 %488 }
 0x56f   :  { %v491_v29 = vsel %vm165_vm3, %v484_v27, %v489_v28 }
 0x570   :  { %v493_v36 = vrot.slane %v491_v29, 2 }
 0x571   :  { %v590_v38 = vpop.permute.xlu1 %589 }
 0x572   :  { %2359 = vmatmul.mubr.msk.f32.vlgmr.msra.gmra.mxu1 %vm281_vm4, %v493_v36  ;;  %2370 = vmatmul.mubr.msk.f32.vlgmr.msra.gmra.mxu0 %vm165_vm3, %v590_v38 }
 0x573   :  { %2373 = vmatpush3.msra.mxu0 %v2846_v30  ;;  %2392 = vmatpush3.msra.mxu1 %v2771_v2 }
 0x574   :  { %2374 = vmatprep.subr.mxu0 %v2684_v0  ;;  %2393 = vmatprep.subr.mxu1 %v2684_v0 }
 0x575   :  { %2375 = vmatpush3.msra.mxu0 %v2851_v31  ;;  %2394 = vmatpush3.msra.mxu1 %v2783_v4 }
 0x576   :  { %2376 = vmatprep.subr.mxu0 %v2684_v0  ;;  %2395 = vmatprep.subr.mxu1 %v2684_v0 }
 0x577   :  { %2377 = vmatpush3.msra.mxu0 %v2858_v32  ;;  %2396 = vmatpush3.msra.mxu1 %v2797_v7 }
 0x578   :  { %2378 = vmatprep.subr.mxu0 %v2684_v0  ;;  %2388 = vmatprep.mubr.msk.f32.mxu0 %vm2685_vm1, %v2684_v0 }
 0x579   :  { %2379 = vmatpush3.msra.mxu0 %v2865_v33  ;;  %2397 = vmatprep.subr.mxu1 %v2684_v0 }
 0x57a   :  { %2380 = vmatprep.subr.mxu0 %v2684_v0  ;;  %2398 = vmatpush3.msra.mxu1 %v2803_v8 }
 0x57b   :  { %2381 = vmatpush3.msra.mxu0 %v2872_v34  ;;  %2399 = vmatprep.mubr.msk.f32.mxu1 %vm2685_vm1, %v2684_v0 }
 0x57c   :  { %2382 = vmatprep.subr.mxu0 %v2684_v0  ;;  %2402 = vmatprep.subr.mxu1 %v2684_v0 }
 0x57d   :  { %2383 = vmatpush3.msra.mxu0 %v2879_v35 }
 0x57e   :  { %2384 = vmatprep.subr.mxu0 %v2684_v0 }
 0x57f   :  { %2385 = vmatpush3.msra.mxu0 %v2887_v37 }
 0x580   :  { %2386 = vmatprep.subr.mxu0 %v2684_v0 }
 0x581   :  { %2387 = vmatpush3.msra.mxu0 %v2900_v39 }
 0x582   :  { %2421 = vmatprep.subr.mxu0 %v2684_v0 }
 0x632   :  { %v562_v40 = vpop.f32.mrf.mxu1  ;;  %v659_v41 = vpop.f32.mrf.mxu0 }
 0x633   :  { %v563_v42 = vadd.f32 %v2939_v45, %v562_v40  ;;  %v664_v43 = vrot.slane %v659_v41, 4 }
 0x634   :  { %v2360_v44 = vpop.f32.mrf.mxu1  ;;  %v2371_v46 = vpop.f32.mrf.mxu0 }
 0x635   :  { %2593 = vtanh.f32 %v563_v42  ;;  %v666_v47 = vadd.f32 %v664_v43, %v2831_v14  ;;  %v566_v50 = vmul.f32 0.5, %v563_v42 }
 0x637   :  { %2595 = vtanh.f32 %v666_v47  ;;  %v667_v51 = vmul.f32 0.5, %v666_v47 }
 0x638   :  { %2597 = vtanh.f32 %v566_v50 }
 0x639   :  { %2599 = vtanh.f32 %v667_v51 }
 0x642   :  { %v2594_v48 = vpop.eup %2593 }
 0x643   :  { %573 = vrot.lane.b32.xlu0 %v2594_v48, %s2686_s15 }
 0x644   :  { %v2596_v49 = vpop.eup %2595 }
 0x645   :  { %677 = vrot.lane.b32.xlu1 %v2596_v49, %s2686_s15  ;;  %v2598_v52 = vpop.eup %2597 }
 0x646   :  { %v2600_v53 = vpop.eup %2599  ;;  %v568_v54 = vadd.f32 1.0, %v2598_v52 }
 0x647   :  { %v669_v55 = vadd.f32 1.0, %v2600_v53 }
 0x648   :  { %v569_v56 = vmul.f32 0.5, %v568_v54 }
 0x649   :  { %v670_v59 = vmul.f32 0.5, %v669_v55 }
 0x64a   :  { %v571_v62 = vmul.f32 %v569_v56, %v2952_v16 }
 0x64b   :  { %v675_v5 = vmul.f32 %v673_v63, %v670_v59 }
 0x6b5   :  { %v574_v57 = vpop.permute.xlu0 %573 }
 0x6b6   :  { %v576_v58 = vmul.f32 %v574_v57, %v569_v56 }
 0x6b7   :  { %v678_v60 = vpop.permute.xlu1 %677 }
 0x6b8   :  { %578 = vrot.lane.b32.xlu0 %v576_v58, %s2686_s15  ;;  %v680_v61 = vmul.f32 %v678_v60, %v670_v59 }
 0x6ba   :  { %682 = vrot.lane.b32.xlu1 %v680_v61, %s2686_s15 }
 0x72a   :  { %v579_v1 = vpop.permute.xlu0 %578 }
 0x72b   :  { %v3005_v3 = vadd.f32 %v579_v1, %v571_v62 }
 0x72c   :  { %v683_v6 = vpop.permute.xlu1 %682 }
 0x72d   :  { %2601 = vtanh.f32 %v3005_v3  ;;  %v3008_v9 = vadd.f32 %v683_v6, %v675_v5 }
 0x72f   :  { %2603 = vtanh.f32 %v3008_v9 }
 0x73a   :  { %v2602_v10 = vpop.eup %2601 }
 0x73b   :  { %584 = vrot.lane.b32.xlu0 %v2602_v10, %s2686_s15 }
 0x73c   :  { %v2604_v11 = vpop.eup %2603 }
 0x73d   :  { %688 = vrot.lane.b32.xlu1 %v2604_v11, %s2686_s15 }
 0x7ad   :  { %v585_v13 = vpop.permute.xlu0 %584 }
 0x7ae   :  { %v3013_v15 = vmul.f32 %v585_v13, %v569_v56  ;;  %v883_v56 = vrot.slane %v3008_v9, 6 }
 0x7af   :  { %v689_v17 = vpop.permute.xlu1 %688 }
 0x7b0   :  { %v697_v16 = vrot.slane %v3013_v15, 4  ;;  %v691_v18 = vmul.f32 %v689_v17, %v670_v59  ;;  %v1840_v1 = vrot.slane %v3013_v15, 6 }
 0x7b2   :  { %698 = vrot.lane.b32.xlu1 %v697_v16, %s2688_s7  ;;  %693 = vrot.lane.b32.xlu0 %v691_v18, %s2687_s6  ;;  %v798_v19 = vrot.slane %v691_v18, 4  ;;  %v1854_v13 = vsel %vm1853_vm5, %v2960_v22, %v1840_v1 }
 0x7b6   :  { %799 = vrot.lane.b32.xlu0 %v798_v19, %s2687_s6 }
 0x824   :  { %v699_v20 = vpop.permute.xlu1 %698  ;;  %v694_v21 = vpop.permute.xlu0 %693 }
 0x825   :  { %v701_v23 = vsel %vm165_vm3, %v694_v21, %v699_v20 }
 0x826   :  { %v703_v24 = vrot.slane %v701_v23, 4 }
 0x828   :  { %v800_v25 = vpop.permute.xlu0 %799  ;;  %2389 = vmatmul.mubr.msk.f32.vlgmr.msra.gmra.mxu0 %vm281_vm4, %v703_v24 }
 0x829   :  { %2400 = vmatmul.mubr.msk.f32.vlgmr.msra.gmra.mxu1 %vm165_vm3, %v800_v25  ;;  %2422 = vmatpush3.msra.mxu0 %v2771_v2 }
 0x82a   :  { %2403 = vmatpush3.msra.mxu1 %v2846_v30  ;;  %2423 = vmatprep.subr.mxu0 %v2684_v0 }
 0x82b   :  { %2404 = vmatprep.subr.mxu1 %v2684_v0  ;;  %2424 = vmatpush3.msra.mxu0 %v2783_v4 }
 0x82c   :  { %2405 = vmatpush3.msra.mxu1 %v2851_v31  ;;  %2425 = vmatprep.subr.mxu0 %v2684_v0 }
 0x82d   :  { %2406 = vmatprep.subr.mxu1 %v2684_v0  ;;  %2426 = vmatpush3.msra.mxu0 %v2797_v7 }
 0x82e   :  { %2407 = vmatpush3.msra.mxu1 %v2858_v32  ;;  %2418 = vmatprep.mubr.msk.f32.mxu1 %vm2685_vm1, %v2684_v0 }
 0x82f   :  { %2408 = vmatprep.subr.mxu1 %v2684_v0  ;;  %2427 = vmatprep.subr.mxu0 %v2684_v0 }
 0x830   :  { %2409 = vmatpush3.msra.mxu1 %v2865_v33  ;;  %2428 = vmatpush3.msra.mxu0 %v2803_v8 }
 0x831   :  { %2410 = vmatprep.subr.mxu1 %v2684_v0  ;;  %2429 = vmatprep.mubr.msk.f32.mxu0 %vm2685_vm1, %v2684_v0 }
 0x832   :  { %2411 = vmatpush3.msra.mxu1 %v2872_v34  ;;  %2432 = vmatprep.subr.mxu0 %v2684_v0 }
 0x833   :  { %2412 = vmatprep.subr.mxu1 %v2684_v0 }
 0x834   :  { %2413 = vmatpush3.msra.mxu1 %v2879_v35 }
 0x835   :  { %2414 = vmatprep.subr.mxu1 %v2684_v0 }
 0x836   :  { %2415 = vmatpush3.msra.mxu1 %v2887_v37 }
 0x837   :  { %2416 = vmatprep.subr.mxu1 %v2684_v0 }
 0x838   :  { %2417 = vmatpush3.msra.mxu1 %v2900_v39 }
 0x839   :  { %2451 = vmatprep.subr.mxu1 %v2684_v0 }
 0x8e8   :  { %v772_v26 = vpop.f32.mrf.mxu0 }
 0x8e9   :  { %v773_v27 = vadd.f32 %v2939_v45, %v772_v26  ;;  %v869_v28 = vpop.f32.mrf.mxu1 }
 0x8ea   :  { %v874_v29 = vrot.slane %v869_v28, 2  ;;  %v2390_v36 = vpop.f32.mrf.mxu0 }
 0x8eb   :  { %2605 = vtanh.f32 %v773_v27  ;;  %v2401_v38 = vpop.f32.mrf.mxu1  ;;  %v776_v43 = vmul.f32 0.5, %v773_v27 }
 0x8ec   :  { %v876_v40 = vadd.f32 %v874_v29, %v2831_v14 }
 0x8ee   :  { %2607 = vtanh.f32 %v876_v40  ;;  %v877_v44 = vmul.f32 0.5, %v876_v40 }
 0x8ef   :  { %2609 = vtanh.f32 %v776_v43 }
 0x8f0   :  { %2611 = vtanh.f32 %v877_v44 }
 0x8f8   :  { %v2606_v41 = vpop.eup %2605 }
 0x8f9   :  { %783 = vrot.lane.b32.xlu1 %v2606_v41, %s2686_s15 }
 0x8fb   :  { %v2608_v42 = vpop.eup %2607 }
 0x8fc   :  { %887 = vrot.lane.b32.xlu0 %v2608_v42, %s2686_s15  ;;  %v2610_v46 = vpop.eup %2609 }
 0x8fd   :  { %v2612_v47 = vpop.eup %2611  ;;  %v778_v48 = vadd.f32 1.0, %v2610_v46 }
 0x8fe   :  { %v879_v49 = vadd.f32 1.0, %v2612_v47 }
 0x8ff   :  { %v779_v50 = vmul.f32 0.5, %v778_v48 }
 0x900   :  { %v880_v53 = vmul.f32 0.5, %v879_v49 }
 0x901   :  { %v781_v55 = vmul.f32 %v779_v50, %v3005_v3 }
 0x902   :  { %v885_v59 = vmul.f32 %v883_v56, %v880_v53 }
 0x96b   :  { %v784_v51 = vpop.permute.xlu1 %783 }
 0x96c   :  { %v786_v52 = vmul.f32 %v784_v51, %v779_v50 }
 0x96e   :  { %v888_v14 = vpop.permute.xlu0 %887  ;;  %788 = vrot.lane.b32.xlu1 %v786_v52, %s2686_s15 }
 0x96f   :  { %v890_v54 = vmul.f32 %v888_v14, %v880_v53 }
 0x971   :  { %892 = vrot.lane.b32.xlu0 %v890_v54, %s2686_s15 }
 0x9e0   :  { %v789_v57 = vpop.permute.xlu1 %788 }
 0x9e1   :  { %v3058_v58 = vadd.f32 %v789_v57, %v781_v55 }
 0x9e3   :  { %2613 = vtanh.f32 %v3058_v58  ;;  %v893_v60 = vpop.permute.xlu0 %892 }
 0x9e4   :  { %v3061_v61 = vadd.f32 %v893_v60, %v885_v59 }
 0x9e6   :  { %2615 = vtanh.f32 %v3061_v61  ;;  %v1090_v51 = vrot.slane %v3061_v61, 6 }
 0x9f0   :  { %v2614_v62 = vpop.eup %2613 }
 0x9f1   :  { %794 = vrot.lane.b32.xlu1 %v2614_v62, %s2686_s15 }
 0x9f3   :  { %v2616_v63 = vpop.eup %2615 }
 0x9f4   :  { %898 = vrot.lane.b32.xlu0 %v2616_v63, %s2686_s15 }
 0xa63   :  { %v795_v3 = vpop.permute.xlu1 %794 }
 0xa64   :  { %v797_v5 = vmul.f32 %v795_v3, %v779_v50 }
 0xa66   :  { %v907_v6 = vrot.slane %v797_v5, 2  ;;  %v1842_v9 = vrot.slane %v797_v5, 4  ;;  %v899_v10 = vpop.permute.xlu0 %898 }
 0xa67   :  { %v901_v11 = vmul.f32 %v899_v10, %v880_v53 }
 0xa68   :  { %908 = vrot.lane.b32.xlu0 %v907_v6, %s2688_s7  ;;  %v3071_v16 = vsel %vm67_vm0, %v1854_v13, %v1842_v9 }
 0xa69   :  { %903 = vrot.lane.b32.xlu1 %v901_v11, %s2687_s6  ;;  %v1008_v17 = vrot.slane %v901_v11, 6 }
 0xa6d   :  { %1009 = vrot.lane.b32.xlu1 %v1008_v17, %s2687_s6 }
 0xada   :  { %v909_v15 = vpop.permute.xlu0 %908 }
 0xadb   :  { %v904_v18 = vpop.permute.xlu1 %903 }
 0xadc   :  { %v911_v19 = vsel %vm165_vm3, %v904_v18, %v909_v15 }
 0xadd   :  { %v913_v20 = vrot.slane %v911_v19, 6 }
 0xadf   :  { %2419 = vmatmul.mubr.msk.f32.vlgmr.msra.gmra.mxu1 %vm281_vm4, %v913_v20  ;;  %v1010_v21 = vpop.permute.xlu1 %1009 }
 0xae0   :  { %2430 = vmatmul.mubr.msk.f32.vlgmr.msra.gmra.mxu0 %vm165_vm3, %v1010_v21  ;;  %2452 = vmatpush3.msra.mxu1 %v2771_v2 }
 0xae1   :  { %2433 = vmatpush3.msra.mxu0 %v2846_v30  ;;  %2453 = vmatprep.subr.mxu1 %v2684_v0 }
 0xae2   :  { %2434 = vmatprep.subr.mxu0 %v2684_v0  ;;  %2454 = vmatpush3.msra.mxu1 %v2783_v4 }
 0xae3   :  { %2435 = vmatpush3.msra.mxu0 %v2851_v31  ;;  %2455 = vmatprep.subr.mxu1 %v2684_v0 }
 0xae4   :  { %2436 = vmatprep.subr.mxu0 %v2684_v0  ;;  %2456 = vmatpush3.msra.mxu1 %v2797_v7 }
 0xae5   :  { %2437 = vmatpush3.msra.mxu0 %v2858_v32  ;;  %2457 = vmatprep.subr.mxu1 %v2684_v0 }
 0xae6   :  { %2438 = vmatprep.subr.mxu0 %v2684_v0  ;;  %2458 = vmatpush3.msra.mxu1 %v2803_v8 }
 0xae7   :  { %2439 = vmatpush3.msra.mxu0 %v2865_v33  ;;  %2459 = vmatprep.mubr.msk.f32.mxu1 %vm2685_vm1, %v2684_v0 }
 0xae8   :  { %2440 = vmatprep.subr.mxu0 %v2684_v0  ;;  %2448 = vmatprep.mubr.msk.f32.mxu0 %vm2685_vm1, %v2684_v0 }
 0xae9   :  { %2441 = vmatpush3.msra.mxu0 %v2872_v34  ;;  %2462 = vmatprep.subr.mxu1 %v2684_v0 }
 0xaea   :  { %2442 = vmatprep.subr.mxu0 %v2684_v0 }
 0xaeb   :  { %2443 = vmatpush3.msra.mxu0 %v2879_v35 }
 0xaec   :  { %2444 = vmatprep.subr.mxu0 %v2684_v0 }
 0xaed   :  { %2445 = vmatpush3.msra.mxu0 %v2887_v37 }
 0xaee   :  { %2446 = vmatprep.subr.mxu0 %v2684_v0 }
 0xaef   :  { %2447 = vmatpush3.msra.mxu0 %v2900_v39 }
 0xaf0   :  { %2481 = vmatprep.subr.mxu0 %v2684_v0 }
 0xb9f   :  { %v982_v22 = vpop.f32.mrf.mxu1 }
 0xba0   :  { %v983_v23 = vadd.f32 %v2939_v45, %v982_v22  ;;  %v1079_v24 = vpop.f32.mrf.mxu0 }
 0xba1   :  { %v1083_v25 = vadd.f32 %v1079_v24, %v2829_v12  ;;  %v2420_v26 = vpop.f32.mrf.mxu1 }
 0xba2   :  { %2617 = vtanh.f32 %v983_v23  ;;  %v2431_v27 = vpop.f32.mrf.mxu0  ;;  %v986_v36 = vmul.f32 0.5, %v983_v23 }
 0xba3   :  { %2619 = vtanh.f32 %v1083_v25  ;;  %v1084_v38 = vmul.f32 0.5, %v1083_v25 }
 0xba4   :  { %2621 = vtanh.f32 %v986_v36 }
 0xba5   :  { %2623 = vtanh.f32 %v1084_v38 }
 0xbaf   :  { %v2618_v28 = vpop.eup %2617 }
 0xbb0   :  { %v2620_v29 = vpop.eup %2619  ;;  %993 = vrot.lane.b32.xlu0 %v2618_v28, %s2686_s15 }
 0xbb1   :  { %1094 = vrot.lane.b32.xlu1 %v2620_v29, %s2686_s15  ;;  %v2622_v40 = vpop.eup %2621 }
 0xbb2   :  { %v2624_v41 = vpop.eup %2623  ;;  %v988_v42 = vadd.f32 1.0, %v2622_v40 }
 0xbb3   :  { %v1086_v43 = vadd.f32 1.0, %v2624_v41 }
 0xbb4   :  { %v989_v44 = vmul.f32 0.5, %v988_v42 }
 0xbb5   :  { %v1087_v47 = vmul.f32 0.5, %v1086_v43 }
 0xbb6   :  { %v991_v52 = vmul.f32 %v989_v44, %v3058_v58 }
 0xbb7   :  { %v1092_v14 = vmul.f32 %v1090_v51, %v1087_v47 }
 0xc22   :  { %v994_v46 = vpop.permute.xlu0 %993 }
 0xc23   :  { %v996_v48 = vmul.f32 %v994_v46, %v989_v44  ;;  %v1095_v49 = vpop.permute.xlu1 %1094 }
 0xc24   :  { %v1097_v50 = vmul.f32 %v1095_v49, %v1087_v47 }
 0xc25   :  { %998 = vrot.lane.b32.xlu0 %v996_v48, %s2686_s15 }
 0xc26   :  { %1099 = vrot.lane.b32.xlu1 %v1097_v50, %s2686_s15 }
 0xc97   :  { %v999_v53 = vpop.permute.xlu0 %998 }
 0xc98   :  { %v3114_v54 = vadd.f32 %v999_v53, %v991_v52  ;;  %v1100_v55 = vpop.permute.xlu1 %1099 }
 0xc99   :  { %v3116_v56 = vadd.f32 %v1100_v55, %v1092_v14 }
 0xc9a   :  { %2625 = vtanh.f32 %v3114_v54 }
 0xc9b   :  { %2627 = vtanh.f32 %v3116_v56  ;;  %v1295_v28 = vrot.slane %v3116_v56, 6  ;;  %v2671_v56 = vld [vmem:[%s3353_s2 + $0x18] sm:$0xff] }
 0xca7   :  { %v2626_v57 = vpop.eup %2625 }
 0xca8   :  { %v2628_v59 = vpop.eup %2627  ;;  %1004 = vrot.lane.b32.xlu0 %v2626_v57, %s2686_s15  ;;  %v2672_v57 = vld [vmem:[%s3353_s2 + $0x10] sm:$0xff] }
 0xca9   :  { %1105 = vrot.lane.b32.xlu1 %v2628_v59, %s2686_s15 }
 0xd1a   :  { %v1005_v60 = vpop.permute.xlu0 %1004 }
 0xd1b   :  { %v1007_v61 = vmul.f32 %v1005_v60, %v989_v44  ;;  %v1106_v58 = vpop.permute.xlu1 %1105 }
 0xd1c   :  { %v1108_v62 = vmul.f32 %v1106_v58, %v1087_v47 }
 0xd1d   :  { %v1844_v63 = vrot.slane %v1007_v61, 2  ;;  %1114 = vrot.lane.b32.xlu1 %v1007_v61, %s2688_s7 }
 0xd1e   :  { %1110 = vrot.lane.b32.xlu0 %v1108_v62, %s2687_s6 }
 0xd1f   :  { %v3126_v1 = vsel %vm1856_vm6, %v3071_v16, %v1844_v63 }
 0xd8f   :  { %v1115_v3 = vpop.permute.xlu1 %1114 }
 0xd90   :  { %v1111_v5 = vpop.permute.xlu0 %1110 }
 0xd91   :  { %v1117_v6 = vsel %vm165_vm3, %v1111_v5, %v1115_v3  ;;  %2460 = vmatmul.mubr.msk.f32.vlgmr.msra.gmra.mxu1 %vm165_vm3, %v1111_v5 }
 0xd92   :  { %2449 = vmatmul.mubr.msk.f32.vlgmr.msra.gmra.mxu0 %vm281_vm4, %v1117_v6  ;;  %2463 = vmatpush3.msra.mxu1 %v2846_v30 }
 0xd93   :  { %2464 = vmatprep.subr.mxu1 %v2684_v0  ;;  %2482 = vmatpush3.msra.mxu0 %v2771_v2 }
 0xd94   :  { %2465 = vmatpush3.msra.mxu1 %v2851_v31  ;;  %2483 = vmatprep.subr.mxu0 %v2684_v0 }
 0xd95   :  { %2466 = vmatprep.subr.mxu1 %v2684_v0  ;;  %2484 = vmatpush3.msra.mxu0 %v2783_v4 }
 0xd96   :  { %2467 = vmatpush3.msra.mxu1 %v2858_v32  ;;  %2485 = vmatprep.subr.mxu0 %v2684_v0 }
 0xd97   :  { %2468 = vmatprep.subr.mxu1 %v2684_v0  ;;  %2486 = vmatpush3.msra.mxu0 %v2797_v7 }
 0xd98   :  { %2469 = vmatpush3.msra.mxu1 %v2865_v33  ;;  %2487 = vmatprep.subr.mxu0 %v2684_v0 }
 0xd99   :  { %2470 = vmatprep.subr.mxu1 %v2684_v0  ;;  %2478 = vmatprep.mubr.msk.f32.mxu1 %vm2685_vm1, %v2684_v0 }
 0xd9a   :  { %2471 = vmatpush3.msra.mxu1 %v2872_v34  ;;  %2488 = vmatpush3.msra.mxu0 %v2803_v8 }
 0xd9b   :  { %2472 = vmatprep.subr.mxu1 %v2684_v0  ;;  %2489 = vmatprep.mubr.msk.f32.mxu0 %vm2685_vm1, %v2684_v0 }
 0xd9c   :  { %2473 = vmatpush3.msra.mxu1 %v2879_v35  ;;  %2492 = vmatprep.subr.mxu0 %v2684_v0 }
 0xd9d   :  { %2474 = vmatprep.subr.mxu1 %v2684_v0 }
 0xd9e   :  { %2475 = vmatpush3.msra.mxu1 %v2887_v37 }
 0xd9f   :  { %2476 = vmatprep.subr.mxu1 %v2684_v0 }
 0xda0   :  { %2477 = vmatpush3.msra.mxu1 %v2900_v39 }
 0xda1   :  { %2511 = vmatprep.subr.mxu1 %v2684_v0 }
 0xe51   :  { %v1281_v2 = vpop.f32.mrf.mxu1 }
 0xe52   :  { %v1286_v4 = vrot.slane %v1281_v2, 6  ;;  %v1187_v7 = vpop.f32.mrf.mxu0 }
 0xe53   :  { %v1188_v8 = vadd.f32 %v2939_v45, %v1187_v7  ;;  %v2461_v9 = vpop.f32.mrf.mxu1 }
 0xe54   :  { %v1288_v10 = vadd.f32 %v1286_v4, %v2829_v12  ;;  %v2450_v11 = vpop.f32.mrf.mxu0 }
 0xe55   :  { %2629 = vtanh.f32 %v1188_v8  ;;  %v1191_v17 = vmul.f32 0.5, %v1188_v8 }
 0xe56   :  { %2631 = vtanh.f32 %v1288_v10  ;;  %v1289_v15 = vmul.f32 0.5, %v1288_v10 }
 0xe57   :  { %2633 = vtanh.f32 %v1191_v17 }
 0xe58   :  { %2635 = vtanh.f32 %v1289_v15 }
 0xe62   :  { %v2630_v13 = vpop.eup %2629 }
 0xe63   :  { %v2632_v16 = vpop.eup %2631  ;;  %1198 = vrot.lane.b32.xlu0 %v2630_v13, %s2686_s15 }
 0xe64   :  { %1299 = vrot.lane.b32.xlu1 %v2632_v16, %s2686_s15  ;;  %v2634_v18 = vpop.eup %2633 }
 0xe65   :  { %v2636_v19 = vpop.eup %2635  ;;  %v1193_v20 = vadd.f32 1.0, %v2634_v18 }
 0xe66   :  { %v1291_v21 = vadd.f32 1.0, %v2636_v19 }
 0xe67   :  { %v1194_v22 = vmul.f32 0.5, %v1193_v20 }
 0xe68   :  { %v1292_v24 = vmul.f32 0.5, %v1291_v21 }
 0xe69   :  { %v1196_v29 = vmul.f32 %v1194_v22, %v3114_v54 }
 0xe6a   :  { %v1297_v38 = vmul.f32 %v1295_v28, %v1292_v24 }
 0xed5   :  { %v1199_v23 = vpop.permute.xlu0 %1198 }
 0xed6   :  { %v1201_v25 = vmul.f32 %v1199_v23, %v1194_v22  ;;  %v1300_v26 = vpop.permute.xlu1 %1299 }
 0xed7   :  { %v1302_v27 = vmul.f32 %v1300_v26, %v1292_v24 }
 0xed8   :  { %1203 = vrot.lane.b32.xlu0 %v1201_v25, %s2686_s15 }
 0xed9   :  { %1304 = vrot.lane.b32.xlu1 %v1302_v27, %s2686_s15 }
 0xf4a   :  { %v1204_v36 = vpop.permute.xlu0 %1203 }
 0xf4b   :  { %v3167_v40 = vadd.f32 %v1204_v36, %v1196_v29  ;;  %v1305_v41 = vpop.permute.xlu1 %1304 }
 0xf4c   :  { %v3169_v42 = vadd.f32 %v1305_v41, %v1297_v38  ;;  %v2675_v41 = vld [vmem:[%s3358_s4 + $0x38] sm:$0xff] }
 0xf4d   :  { %2637 = vtanh.f32 %v3167_v40 }
 0xf4e   :  { %2639 = vtanh.f32 %v3169_v42  ;;  %v1505_v13 = vrot.slane %v3169_v42, 6  ;;  %v2676_v42 = vld [vmem:[%s3358_s4 + $0x30] sm:$0xff] }
 0xf5a   :  { %v2638_v43 = vpop.eup %2637 }
 0xf5b   :  { %v2640_v44 = vpop.eup %2639  ;;  %1209 = vrot.lane.b32.xlu0 %v2638_v43, %s2686_s15  ;;  %v2677_v43 = vld [vmem:[%s3358_s4 + $0x28] sm:$0xff] }
 0xf5c   :  { %1310 = vrot.lane.b32.xlu1 %v2640_v44, %s2686_s15  ;;  %v2678_v44 = vld [vmem:[%s3358_s4 + $0x20] sm:$0xff] }
 0xfcd   :  { %v1210_v46 = vpop.permute.xlu0 %1209 }
 0xfce   :  { %v3175_v47 = vmul.f32 %v1210_v46, %v1194_v22  ;;  %v1311_v48 = vpop.permute.xlu1 %1310  ;;  %v2679_v46 = vld [vmem:[%s3358_s4 + $0x18] sm:$0xff] }
 0xfcf   :  { %v1313_v49 = vmul.f32 %v1311_v48, %v1292_v24  ;;  %v2680_v48 = vld [vmem:[%s3358_s4 + $0x10] sm:$0xff] }
 0xfd0   :  { %v1319_v50 = vrot.slane %v3175_v47, 6 }
 0xfd1   :  { %1315 = vrot.lane.b32.xlu0 %v1313_v49, %s2687_s6  ;;  %v1420_v51 = vrot.slane %v1313_v49, 2  ;;  %v2681_v49 = vld [vmem:[%s3358_s4 + $0x8] sm:$0xff] }
 0xfd2   :  { %1320 = vrot.lane.b32.xlu1 %v1319_v50, %s2688_s7  ;;  %v2682_v50 = vld [vmem:[%s3358_s4] sm:$0xff] }
 0xfd5   :  { %1421 = vrot.lane.b32.xlu0 %v1420_v51, %s2687_s6 }
0x1043   :  { %v1316_v52 = vpop.permute.xlu0 %1315 }
0x1044   :  { %v1321_v53 = vpop.permute.xlu1 %1320 }
0x1045   :  { %v1323_v14 = vsel %vm165_vm3, %v1316_v52, %v1321_v53 }
0x1046   :  { %v1325_v54 = vrot.slane %v1323_v14, 2 }
0x1047   :  { %v1422_v55 = vpop.permute.xlu0 %1421 }
0x1048   :  { %2479 = vmatmul.mubr.msk.f32.vlgmr.msra.gmra.mxu1 %vm281_vm4, %v1325_v54  ;;  %2490 = vmatmul.mubr.msk.f32.vlgmr.msra.gmra.mxu0 %vm165_vm3, %v1422_v55 }
0x1049   :  { %2493 = vmatpush3.msra.mxu0 %v2846_v30  ;;  %2512 = vmatpush3.msra.mxu1 %v2671_v56  ;;  %v2673_v30 = vld [vmem:[%s3353_s2 + $0x8] sm:$0xff] }
0x104a   :  { %2494 = vmatprep.subr.mxu0 %v2684_v0  ;;  %2513 = vmatprep.subr.mxu1 %v2684_v0 }
0x104b   :  { %2495 = vmatpush3.msra.mxu0 %v2851_v31  ;;  %2514 = vmatpush3.msra.mxu1 %v2672_v57  ;;  %v2674_v31 = vld [vmem:[%s3353_s2] sm:$0xff] }
0x104c   :  { %2496 = vmatprep.subr.mxu0 %v2684_v0  ;;  %2515 = vmatprep.subr.mxu1 %v2684_v0 }
0x104d   :  { %2497 = vmatpush3.msra.mxu0 %v2858_v32  ;;  %2516 = vmatpush3.msra.mxu1 %v2673_v30 }
0x104e   :  { %2498 = vmatprep.subr.mxu0 %v2684_v0  ;;  %2508 = vmatprep.mubr.msk.f32.mxu0 %vm2685_vm1, %v2684_v0 }
0x104f   :  { %2499 = vmatpush3.msra.mxu0 %v2865_v33  ;;  %2517 = vmatprep.subr.mxu1 %v2684_v0 }
0x1050   :  { %2500 = vmatprep.subr.mxu0 %v2684_v0  ;;  %2518 = vmatpush3.msra.mxu1 %v2674_v31 }
0x1051   :  { %2501 = vmatpush3.msra.mxu0 %v2872_v34  ;;  %2519 = vmatprep.mubr.msk.f32.mxu1 %vm2685_vm1, %v2684_v0 }
0x1052   :  { %2502 = vmatprep.subr.mxu0 %v2684_v0  ;;  %2522 = vmatprep.subr.mxu1 %v2684_v0 }
0x1053   :  { %2503 = vmatpush3.msra.mxu0 %v2879_v35 }
0x1054   :  { %2504 = vmatprep.subr.mxu0 %v2684_v0 }
0x1055   :  { %2505 = vmatpush3.msra.mxu0 %v2887_v37 }
0x1056   :  { %2506 = vmatprep.subr.mxu0 %v2684_v0 }
0x1057   :  { %2507 = vmatpush3.msra.mxu0 %v2900_v39 }
0x1108   :  { %v1394_v32 = vpop.f32.mrf.mxu1  ;;  %v1491_v33 = vpop.f32.mrf.mxu0 }
0x1109   :  { %v1395_v34 = vadd.f32 %v2939_v45, %v1394_v32  ;;  %v1496_v59 = vrot.slane %v1491_v33, 4 }
0x110a   :  { %v2480_v60 = vpop.f32.mrf.mxu1  ;;  %v2491_v61 = vpop.f32.mrf.mxu0 }
0x110b   :  { %2641 = vtanh.f32 %v1395_v34  ;;  %v1498_v58 = vadd.f32 %v1496_v59, %v2829_v12  ;;  %v1398_v37 = vmul.f32 0.5, %v1395_v34 }
0x110d   :  { %2643 = vtanh.f32 %v1498_v58  ;;  %v1499_v63 = vmul.f32 0.5, %v1498_v58 }
0x110e   :  { %2645 = vtanh.f32 %v1398_v37 }
0x110f   :  { %2647 = vtanh.f32 %v1499_v63 }
0x1118   :  { %v2642_v35 = vpop.eup %2641 }
0x1119   :  { %1405 = vrot.lane.b32.xlu1 %v2642_v35, %s2686_s15 }
0x111a   :  { %v2644_v62 = vpop.eup %2643 }
0x111b   :  { %1509 = vrot.lane.b32.xlu0 %v2644_v62, %s2686_s15  ;;  %v2646_v39 = vpop.eup %2645 }
0x111c   :  { %v2648_v3 = vpop.eup %2647  ;;  %v1400_v5 = vadd.f32 1.0, %v2646_v39 }
0x111d   :  { %v1501_v6 = vadd.f32 1.0, %v2648_v3 }
0x111e   :  { %v1401_v2 = vmul.f32 0.5, %v1400_v5 }
0x111f   :  { %v1502_v8 = vmul.f32 0.5, %v1501_v6 }
0x1120   :  { %v1403_v11 = vmul.f32 %v1401_v2, %v3167_v40 }
0x1121   :  { %v1507_v15 = vmul.f32 %v1505_v13, %v1502_v8 }
0x118b   :  { %v1406_v4 = vpop.permute.xlu1 %1405 }
0x118c   :  { %v1408_v7 = vmul.f32 %v1406_v4, %v1401_v2 }
0x118d   :  { %v1510_v9 = vpop.permute.xlu0 %1509 }
0x118e   :  { %1410 = vrot.lane.b32.xlu1 %v1408_v7, %s2686_s15  ;;  %v1512_v10 = vmul.f32 %v1510_v9, %v1502_v8 }
0x1190   :  { %1514 = vrot.lane.b32.xlu0 %v1512_v10, %s2686_s15 }
0x1200   :  { %v1411_v16 = vpop.permute.xlu1 %1410 }
0x1201   :  { %v3227_v17 = vadd.f32 %v1411_v16, %v1403_v11 }
0x1202   :  { %v1515_v18 = vpop.permute.xlu0 %1514 }
0x1203   :  { %2649 = vtanh.f32 %v3227_v17  ;;  %v3230_v19 = vadd.f32 %v1515_v18, %v1507_v15 }
0x1205   :  { %2651 = vtanh.f32 %v3230_v19  ;;  %v1715_v63 = vrot.slane %v3230_v19, 6 }
0x1210   :  { %v2650_v20 = vpop.eup %2649 }
0x1211   :  { %1416 = vrot.lane.b32.xlu1 %v2650_v20, %s2686_s15 }
0x1212   :  { %v2652_v21 = vpop.eup %2651 }
0x1213   :  { %1520 = vrot.lane.b32.xlu0 %v2652_v21, %s2686_s15 }
0x1283   :  { %v1417_v22 = vpop.permute.xlu1 %1416 }
0x1284   :  { %v3235_v23 = vmul.f32 %v1417_v22, %v1401_v2 }
0x1285   :  { %v1521_v25 = vpop.permute.xlu0 %1520 }
0x1286   :  { %v1529_v24 = vrot.slane %v3235_v23, 4  ;;  %v1523_v26 = vmul.f32 %v1521_v25, %v1502_v8  ;;  %v1846_v8 = vrot.slane %v3235_v23, 6 }
0x1288   :  { %1530 = vrot.lane.b32.xlu0 %v1529_v24, %s2688_s7  ;;  %1525 = vrot.lane.b32.xlu1 %v1523_v26, %s2687_s6  ;;  %v1630_v27 = vrot.slane %v1523_v26, 4  ;;  %v1858_v15 = vsel %vm1853_vm5, %v3175_v47, %v1846_v8  ;;  %v2683_v47 = vld [vmem:[%s3359_s5] ss:$0 sm:$0xff] }
0x128c   :  { %1631 = vrot.lane.b32.xlu1 %v1630_v27, %s2687_s6 }
0x12fa   :  { %v1531_v28 = vpop.permute.xlu0 %1530  ;;  %v1526_v29 = vpop.permute.xlu1 %1525 }
0x12fb   :  { %v1533_v36 = vsel %vm165_vm3, %v1526_v29, %v1531_v28 }
0x12fc   :  { %v1535_v38 = vrot.slane %v1533_v36, 4 }
0x12fe   :  { %v1632_v40 = vpop.permute.xlu1 %1631  ;;  %2509 = vmatmul.mubr.msk.f32.vlgmr.msra.gmra.mxu0 %vm281_vm4, %v1535_v38 }
0x12ff   :  { %2520 = vmatmul.mubr.msk.f32.vlgmr.msra.gmra.mxu1 %vm165_vm3, %v1632_v40 }
0x1300   :  { %2523 = vmatpush3.msra.mxu1 %v2675_v41  ;;  %2538 = vmatprep.mubr.msk.f32.mxu1 %vm2685_vm1, %v2684_v0 }
0x1301   :  { %2524 = vmatprep.subr.mxu1 %v2684_v0 }
0x1302   :  { %2525 = vmatpush3.msra.mxu1 %v2676_v42 }
0x1303   :  { %2526 = vmatprep.subr.mxu1 %v2684_v0 }
0x1304   :  { %2527 = vmatpush3.msra.mxu1 %v2677_v43 }
0x1305   :  { %2528 = vmatprep.subr.mxu1 %v2684_v0 }
0x1306   :  { %2529 = vmatpush3.msra.mxu1 %v2678_v44 }
0x1307   :  { %2530 = vmatprep.subr.mxu1 %v2684_v0 }
0x1308   :  { %2531 = vmatpush3.msra.mxu1 %v2679_v46  ;;  %v1864_v46 = vld [vmem:[%s3360_s8 + $0x18] sm:$0xff] }
0x1309   :  { %2532 = vmatprep.subr.mxu1 %v2684_v0  ;;  %2541 = vmatprep.subr.mxu0 %v1864_v46 }
0x130a   :  { %2533 = vmatpush3.msra.mxu1 %v2680_v48  ;;  %v1863_v48 = vld [vmem:[%s3360_s8 + $0x10] sm:$0xff]  ;;  %2542 = vmatpush3.msra.mxu0 %v1864_v46 }
0x130b   :  { %2534 = vmatprep.subr.mxu1 %v2684_v0  ;;  %2543 = vmatprep.subr.mxu0 %v1863_v48 }
0x130c   :  { %2535 = vmatpush3.msra.mxu1 %v2681_v49  ;;  %2544 = vmatpush3.msra.mxu0 %v1863_v48  ;;  %v1861_v49 = vld [vmem:[%s3360_s8] sm:$0xff] }
0x130d   :  { %2536 = vmatprep.subr.mxu1 %v2684_v0 }
0x130e   :  { %2537 = vmatpush3.msra.mxu1 %v2682_v50 }
0x130f   :  { %2563 = vmatprep.subr.mxu1 %v2684_v0 }
0x13be   :  { %v1604_v51 = vpop.f32.mrf.mxu0 }
0x13bf   :  { %v1605_v52 = vadd.f32 %v2939_v45, %v1604_v51  ;;  %v1701_v53 = vpop.f32.mrf.mxu1 }
0x13c0   :  { %v1706_v14 = vrot.slane %v1701_v53, 2  ;;  %v2510_v54 = vpop.f32.mrf.mxu0 }
0x13c1   :  { %2653 = vtanh.f32 %v1605_v52  ;;  %v2521_v55 = vpop.f32.mrf.mxu1  ;;  %v1608_v31 = vmul.f32 0.5, %v1605_v52 }
0x13c2   :  { %v1708_v56 = vadd.f32 %v1706_v14, %v2829_v12  ;;  %v1962_v55 = vld [vmem:[%s3361_s10 + $0x18] sm:$0xff] }
0x13c4   :  { %2655 = vtanh.f32 %v1708_v56  ;;  %v1709_v32 = vmul.f32 0.5, %v1708_v56  ;;  %v1961_v56 = vld [vmem:[%s3361_s10 + $0x10] sm:$0xff] }
0x13c5   :  { %2657 = vtanh.f32 %v1608_v31  ;;  %v19_v31 = vstv %s3362_s11 }
0x13c6   :  { %2659 = vtanh.f32 %v1709_v32  ;;  %20 = vst [vmem:[#allocation2] sm:$0x1] %v19_v31  ;;  %v2156_v32 = vld [vmem:[%s3363_s9] ss:$0 sm:$0xff] }
0x13ce   :  { %v2654_v57 = vpop.eup %2653 }
0x13cf   :  { %1615 = vrot.lane.b32.xlu0 %v2654_v57, %s2686_s15  ;;  %v1960_v57 = vld [vmem:[%s3361_s10 + $0x8] sm:$0xff] }
0x13d1   :  { %v2656_v30 = vpop.eup %2655 }
0x13d2   :  { %1719 = vrot.lane.b32.xlu1 %v2656_v30, %s2686_s15  ;;  %v2658_v33 = vpop.eup %2657  ;;  %v1959_v30 = vld [vmem:[%s3361_s10] sm:$0xff] }
0x13d3   :  { %v2660_v45 = vpop.eup %2659  ;;  %v1610_v34 = vadd.f32 1.0, %v2658_v33 }
0x13d4   :  { %v1711_v59 = vadd.f32 1.0, %v2660_v45 }
0x13d5   :  { %v1611_v60 = vmul.f32 0.5, %v1610_v34 }
0x13d6   :  { %v1712_v35 = vmul.f32 0.5, %v1711_v59 }
0x13d7   :  { %v1613_v37 = vmul.f32 %v1611_v60, %v3227_v17 }
0x13d8   :  { %v1717_v5 = vmul.f32 %v1715_v63, %v1712_v35  ;;  %v2051_v63 = vld [vmem:[%s3364_s12] sm:$0xff] }
0x1441   :  { %v1616_v61 = vpop.permute.xlu0 %1615 }
0x1442   :  { %v1618_v58 = vmul.f32 %v1616_v61, %v1611_v60 }
0x1444   :  { %v1720_v12 = vpop.permute.xlu1 %1719  ;;  %1620 = vrot.lane.b32.xlu0 %v1618_v58, %s2686_s15  ;;  %v2159_v58 = vld [vmem:[#allocation2] ss:$0 sm:$0xff] }
0x1445   :  { %v1722_v62 = vmul.f32 %v1720_v12, %v1712_v35 }
0x1447   :  { %1724 = vrot.lane.b32.xlu1 %v1722_v62, %s2686_s15 }
0x14b6   :  { %v1621_v39 = vpop.permute.xlu0 %1620 }
0x14b7   :  { %v1623_v3 = vadd.f32 %v1621_v39, %v1613_v37  ;;  %v2052_v39 = vld [vmem:[%s3365_s13] sm:$0xff] }
0x14b9   :  { %2661 = vtanh.f32 %v1623_v3  ;;  %v1725_v6 = vpop.permute.xlu1 %1724 }
0x14ba   :  { %v1727_v2 = vadd.f32 %v1725_v6, %v1717_v5 }
0x14bc   :  { %2663 = vtanh.f32 %v1727_v2 }
0x14c6   :  { %v2662_v4 = vpop.eup %2661 }
0x14c7   :  { %1626 = vrot.lane.b32.xlu0 %v2662_v4, %s2686_s15 }
0x14c9   :  { %v2664_v7 = vpop.eup %2663 }
0x14ca   :  { %1730 = vrot.lane.b32.xlu1 %v2664_v7, %s2686_s15 }
0x1539   :  { %v1627_v9 = vpop.permute.xlu0 %1626 }
0x153a   :  { %v1629_v10 = vmul.f32 %v1627_v9, %v1611_v60 }
0x153c   :  { %v1739_v11 = vrot.slane %v1629_v10, 2  ;;  %v1848_v13 = vrot.slane %v1629_v10, 4  ;;  %v1731_v16 = vpop.permute.xlu1 %1730 }
0x153d   :  { %v1733_v17 = vmul.f32 %v1731_v16, %v1712_v35 }
0x153e   :  { %1740 = vrot.lane.b32.xlu1 %v1739_v11, %s2688_s7  ;;  %v1859_v18 = vsel %vm67_vm0, %v1858_v15, %v1848_v13 }
0x153f   :  { %1735 = vrot.lane.b32.xlu0 %v1733_v17, %s2687_s6 }
0x15b0   :  { %v1741_v19 = vpop.permute.xlu1 %1740 }
0x15b1   :  { %v1736_v20 = vpop.permute.xlu0 %1735 }
0x15b2   :  { %v1743_v21 = vsel %vm165_vm3, %v1736_v20, %v1741_v19 }
0x15b3   :  { %v1745_v22 = vrot.slane %v1743_v21, 6 }
0x15b5   :  { %2539 = vmatmul.mubr.msk.f32.vlgmr.msra.gmra.mxu1 %vm281_vm4, %v1745_v22 }
0x15b6   :  { %2567 = vmatprep.mubr.msk.f32.mxu1 %vm2685_vm1, %v2684_v0 }
0x1675   :  { %v1814_v23 = vpop.f32.mrf.mxu1 }
0x1676   :  { %v1815_v24 = vadd.f32 %v2683_v47, %v1814_v23 }
0x1677   :  { %v2540_v25 = vpop.f32.mrf.mxu1 }
0x1678   :  { %2665 = vtanh.f32 %v1815_v24  ;;  %v1818_v27 = vmul.f32 0.5, %v1815_v24 }
0x167a   :  { %2667 = vtanh.f32 %v1818_v27 }
0x1685   :  { %v2666_v26 = vpop.eup %2665 }
0x1686   :  { %1825 = vrot.lane.b32.xlu0 %v2666_v26, %s2686_s15 }
0x1687   :  { %v2668_v28 = vpop.eup %2667 }
0x1688   :  { %v1820_v29 = vadd.f32 1.0, %v2668_v28 }
0x168a   :  { %v1821_v36 = vmul.f32 0.5, %v1820_v29 }
0x168c   :  { %v1823_v41 = vmul.f32 %v1821_v36, %v1623_v3 }
0x16f8   :  { %v1826_v38 = vpop.permute.xlu0 %1825 }
0x16f9   :  { %v1828_v40 = vmul.f32 %v1826_v38, %v1821_v36 }
0x16fb   :  { %1830 = vrot.lane.b32.xlu1 %v1828_v40, %s2686_s15 }
0x16ff   :  { %1874 = vrot.lane.b32.xlu1 %v3126_v1, %s2687_s6  ;;  %v1862_v1 = vld [vmem:[%s3360_s8 + $0x8] sm:$0xff] }
0x1700   :  { %2545 = vmatprep.subr.mxu0 %v1862_v1 }
0x1701   :  { %2546 = vmatpush3.msra.mxu0 %v1862_v1 }
0x1702   :  { %2547 = vmatprep.subr.mxu0 %v1861_v49 }
0x1703   :  { %2548 = vmatpush3.msra.mxu0 %v1861_v49 }
0x1704   :  { %2552 = vmatprep.subr.mxu0 %v1962_v55 }
0x176d   :  { %v1831_v42 = vpop.permute.xlu1 %1830 }
0x176e   :  { %v1833_v43 = vadd.f32 %v1831_v42, %v1823_v41 }
0x1770   :  { %2669 = vtanh.f32 %v1833_v43 }
0x1771   :  { %v1875_v44 = vpop.permute.xlu1 %1874 }
0x1772   :  { %2549 = vmatprep.mubr.msk.f32.mxu0 %vm165_vm3, %v1875_v44 }
0x177d   :  { %v2670_v50 = vpop.eup %2669 }
0x177e   :  { %1836 = vrot.lane.b32.xlu0 %v2670_v50, %s2686_s15 }
0x17f0   :  { %v1837_v51 = vpop.permute.xlu0 %1836 }
0x17f1   :  { %v1839_v52 = vmul.f32 %v1837_v51, %v1821_v36 }
0x17f3   :  { %v1851_v53 = vrot.slane %v1839_v52, 2 }
0x17f5   :  { %v1860_v14 = vsel %vm1856_vm6, %v1859_v18, %v1851_v53 }
0x17f6   :  { %1876 = vrot.lane.b32.xlu0 %v1860_v14, %s2687_s6 }
0x1868   :  { %v1877_v54 = vpop.permute.xlu0 %1876 }
0x1869   :  { %2550 = vmatmul.mubr.msk.f32.vlgmr.msra.gmra.mxu0 %vm165_vm3, %v1877_v54 }
0x186a   :  { %2553 = vmatpush3.msra.mxu0 %v1962_v55 }
0x186b   :  { %2554 = vmatprep.subr.mxu0 %v1961_v56 }
0x186c   :  { %2555 = vmatpush3.msra.mxu0 %v1961_v56 }
0x186d   :  { %2556 = vmatprep.subr.mxu0 %v1960_v57 }
0x186e   :  { %2557 = vmatpush3.msra.mxu0 %v1960_v57 }
0x186f   :  { %2558 = vmatprep.subr.mxu0 %v1959_v30 }
0x1870   :  { %2559 = vmatpush3.msra.mxu0 %v1959_v30 }
0x1929   :  { %v2551_v33 = vpop.f32.mrf.mxu0 }
0x192a   :  { %v1954_v45 = vadd.f32 %v2551_v33, %v2156_v32 }
0x192b   :  { %v1948_v34 = vpop.f32.mrf.mxu0 }
0x192c   :  { %v1949_v59 = vadd.f32 %v2156_v32, %v1948_v34  ;;  %v1958_v61 = vmax.f32 %v1954_v45, 0.0 }
0x192e   :  { %v1957_v60 = vmax.f32 %v1949_v59, 0.0 }
0x1930   :  { %2560 = vmatprep.mubr.msk.f32.mxu0 %vm165_vm3, %v1957_v60 }
0x1931   :  { %2561 = vmatmul.mubr.msk.f32.vlgmr.msra.gmra.mxu0 %vm165_vm3, %v1958_v61 }
0x19f1   :  { %v2562_v35 = vpop.f32.mrf.mxu0 }
0x19f2   :  { %v2048_v12 = vadd.f32 %v2562_v35, %v2159_v58 }
0x19f3   :  { %v2042_v62 = vpop.f32.mrf.mxu0 }
0x19f4   :  { %v2043_v37 = vadd.f32 %v2159_v58, %v2042_v62  ;;  %2564 = vmatpush3.msra.mxu1 %v2048_v12 }
0x19f5   :  { %2565 = vmatprep.subr.mxu1 %v2684_v0 }
0x19f6   :  { %2566 = vmatpush3.msra.mxu1 %v2043_v37 }
0x19f7   :  { %2568 = vmatmul.mubr.msk.f32.vlgmr.msra.gmra.mxu1 %vm2053_vm7, %v2051_v63 }
0x1ab7   :  { %v2123_v3 = vpop.f32.mrf.mxu1 }
0x1ab8   :  { %v2124_v5 = vadd.f32 %v2123_v3, %v2052_v39 }
0x1ab9   :  { %v2569_v6 = vpop.f32.mrf.mxu1 }
0x1aba   :  { %2128 = vst.msk [vmem:[%s3366_s14] sm:$0xff] %vm2127_vm8, %v2124_v5 }

</bundles_post_ra>
